<compile_context>
chip_gen: v7x
topology: tpu7x:2x2x1
jax: 0.10.0
libtpu: 0.0.40
codegen_flags: <defaults>
</compile_context>

<pallas_src>
import jax
import jax.numpy as jnp
from jax import lax
from jax.experimental import pallas as pl
from jax.experimental.pallas import tpu as pltpu

C_IN, C_H1, C_H2, C_OUT = 64, 64, 128, 1024
BN_EPS = 1e-5
_N_CHUNKS = 4                      # layer-3 output chunking (1024 / 4 = 256 lanes)


def _pointnet_kernel(nv_ref, x_ref, w1_ref, b1_ref, w2_ref, b2_ref,
                     w3_ref, b3_ref, o_ref, acc_ref):
    # nv_ref : (1,) int32 SMEM      true (unpadded) number of points
    # x_ref  : (1, tile_p, 64) f32  one batch element, one tile of points
    # o_ref  : (1, 1, 1024) f32     partial-max output for (batch, split)
    # acc_ref: (8, 1024) f32        running stripe-max scratch (persists over p)
    s = pl.program_id(1)
    p = pl.program_id(2)
    steps = pl.num_programs(2)

    @pl.when(p == 0)
    def _():
        acc_ref[...] = jnp.full(acc_ref.shape, -jnp.inf, acc_ref.dtype)

    # f32 load, in-kernel bf16 cast (no separate HBM cast pass in the wrapper).
    x = x_ref[0].astype(jnp.bfloat16)                              # (tile_p, 64)
    tp = x.shape[0]

    h1 = jnp.dot(x, w1_ref[...], preferred_element_type=jnp.float32)
    h1 = jnp.maximum(h1 + b1_ref[...], 0.0).astype(jnp.bfloat16)   # (tile_p, 64)

    h2 = jnp.dot(h1, w2_ref[...], preferred_element_type=jnp.float32)
    h2 = jnp.maximum(h2 + b2_ref[...], 0.0).astype(jnp.bfloat16)   # (tile_p, 128)

    # Rows past the true point count (zero-padded in the wrapper) -> -inf so
    # they never win the max.
    row = (s * steps + p) * tp + lax.broadcasted_iota(jnp.int32, (tp, 1), 0)
    valid = row < nv_ref[0]

    # Layer-3: chunked over the 1024-wide output; raw matmul max only
    # (bias + ReLU hoisted to the finalize step). Each chunk's (8, 256)
    # stripe-max folds straight into acc_ref -> no (tile_p, 1024) f32 buffer.
    chunk = C_OUT // _N_CHUNKS
    for c in range(_N_CHUNKS):
        w3c = w3_ref[:, c * chunk:(c + 1) * chunk]                 # (128, 256)
        h3c = jnp.dot(h2, w3c, preferred_element_type=jnp.float32)  # (tile_p, 256)
        h3c = jnp.where(valid, h3c, -jnp.inf)
        stripes = jnp.max(h3c.reshape(tp // 8, 8, chunk), axis=0)  # (8, 256)
        acc_ref[:, c * chunk:(c + 1) * chunk] = jnp.maximum(
            acc_ref[:, c * chunk:(c + 1) * chunk], stripes)

    @pl.when(p == steps - 1)
    def _():
        col_max = jnp.max(acc_ref[...], axis=0, keepdims=True)     # (1, 1024)
        o_ref[...] = jnp.maximum(col_max + b3_ref[...], 0.0)[None]  # (1, 1, 1024)


def _choose_tiling(B, N, tile_p, n_psplit):
    """Pick an MXU-sized point tile and a point-axis split so that
    B * n_psplit stays even (both v7x TensorCores busy) without blowing VMEM."""
    if tile_p is None:
        tile_p = 1024 if N >= 1024 else (512 if N >= 512 else 256)
    assert tile_p % 8 == 0
    if n_psplit is None:
        if B % 2 == 0:
            n_psplit = 1              # batch axis alone fills both v7x TCs
        else:
            # Odd batch: split the point axis. Prefer halving the tile over
            # padding a whole extra tile of dead work.
            if pl.cdiv(N, tile_p) % 2 != 0 and tile_p > 256:
                tile_p //= 2
            n_psplit = 2
    n_pad = pl.cdiv(N, tile_p * n_psplit) * (tile_p * n_psplit)
    return tile_p, n_psplit, n_pad


def pointnet_global_features(x_bnc, params, *, tile_p=None, n_psplit=None):
    """x_bnc: (B, N, 64) float32 (transpose of PyTorch's (B, 64, N)).
    Returns (B, 1024) global features."""
    B, N, C = x_bnc.shape
    assert C == C_IN
    tile_p, n_psplit, n_pad = _choose_tiling(B, N, tile_p, n_psplit)
    if n_pad != N:
        # Zero-pad the point axis; padded rows are masked to -inf in-kernel.
        x_bnc = jnp.pad(x_bnc, ((0, 0), (0, n_pad - N), (0, 0)))
    n_blocks = n_pad // tile_p
    steps = n_blocks // n_psplit

    w1, b1, w2, b2, w3, b3 = params
    # bf16 weights (tiny), f32 biases; activations are cast in-kernel.
    w1b = w1.astype(jnp.bfloat16)
    w2b = w2.astype(jnp.bfloat16)
    w3b = w3.astype(jnp.bfloat16)
    n_valid = jnp.array([N], jnp.int32)

    grid = (B, n_psplit, steps)
    full = lambda shape: pl.BlockSpec(shape, lambda b, s, p, nv: (0,) * len(shape))

    partial = pl.pallas_call(
        _pointnet_kernel,
        out_shape=jax.ShapeDtypeStruct((B, n_psplit, C_OUT), jnp.float32),
        grid_spec=pltpu.PrefetchScalarGridSpec(
            num_scalar_prefetch=1,
            grid=grid,
            in_specs=[
                pl.BlockSpec((1, tile_p, C_IN),
                             lambda b, s, p, nv: (b, s * steps + p, 0)),
                full((C_IN, C_H1)), full((1, C_H1)),
                full((C_H1, C_H2)), full((1, C_H2)),
                full((C_H2, C_OUT)), full((1, C_OUT)),
            ],
            out_specs=pl.BlockSpec((1, 1, C_OUT), lambda b, s, p, nv: (b, s, 0)),
            scratch_shapes=[pltpu.VMEM((8, C_OUT), jnp.float32)],
        ),
        compiler_params=pltpu.CompilerParams(
            dimension_semantics=("parallel", "parallel", "arbitrary")),
    )(n_valid, x_bnc, w1b, b1, w2b, b2, w3b, b3)

    # Tiny cross-split reduction (no-op squeeze when n_psplit == 1).
    return jnp.max(partial, axis=1)


def make_params(key, bn=True):
    """Deterministic synthetic weights. Conv1d(kernel=1) weight (C_out, C_in, 1)
    is stored transposed as (C_in, C_out).  BatchNorm1d (eval mode, synthetic
    running stats) is folded into the conv weight/bias (f32)."""
    keys = jax.random.split(key, 12)
    params = []
    dims = [(C_IN, C_H1), (C_H1, C_H2), (C_H2, C_OUT)]
    for i, (cin, cout) in enumerate(dims):
        kw, kb, kg, kbeta = keys[4 * i:4 * i + 4]
        w = jax.random.normal(kw, (cin, cout), jnp.float32) * 0.05
        b = jax.random.normal(kb, (cout,), jnp.float32) * 0.05
        if bn:
            gamma = 1.0 + 0.1 * jax.random.normal(kg, (cout,), jnp.float32)
            beta = 0.1 * jax.random.normal(kbeta, (cout,), jnp.float32)
            run_mean = jnp.zeros((cout,), jnp.float32)
            run_var = jnp.ones((cout,), jnp.float32)
            scale = gamma / jnp.sqrt(run_var + BN_EPS)
            w = w * scale[None, :]
            b = (b - run_mean) * scale + beta
        params.extend([w, b.reshape(1, cout)])
    return tuple(params)


def reference(x_bnc, params):
    """Pure f32 JAX reference (matches the PyTorch eval-mode forward)."""
    w1, b1, w2, b2, w3, b3 = params
    h = jnp.maximum(x_bnc @ w1 + b1, 0.0)
    h = jnp.maximum(h @ w2 + b2, 0.0)
    h = jnp.maximum(h @ w3 + b3, 0.0)
    return jnp.max(h, axis=1)


if __name__ == "__main__":
    key = jax.random.PRNGKey(0)
    kx, kp = jax.random.split(key)

    B, N = 2, 16  # small test shapes; channels fixed at 64 by the module
    # PyTorch input is (B, 64, N) NCL; kernel layout is (B, N, 64).
    x_ncl = jax.random.normal(kx, (B, C_IN, N), jnp.float32)
    x_bnc = jnp.transpose(x_ncl, (0, 2, 1))

    params = make_params(kp, bn=True)

    out = pointnet_global_features(x_bnc, params)
    out = jax.block_until_ready(out)

    ref = reference(x_bnc, params)
    assert out.shape == (B, C_OUT)
    # bf16 matmuls vs f32 reference -> relaxed tolerance.
    assert jnp.allclose(out, ref, atol=3e-2, rtol=3e-2)

    print("KERNEL_OK")
</pallas_src>

<mosaic_0001>
module attributes {stable_mosaic.version = 11 : i64} {
  func.func @_pointnet_kernel(%arg0: i32, %arg1: i32, %arg2: i32, %arg3: memref<1xi32, #tpu.memory_space<smem>>, %arg4: memref<1x256x64xf32, #tpu.memory_space<vmem>>, %arg5: memref<64x64xbf16, #tpu.memory_space<vmem>>, %arg6: memref<1x64xf32, #tpu.memory_space<vmem>>, %arg7: memref<64x128xbf16, #tpu.memory_space<vmem>>, %arg8: memref<1x128xf32, #tpu.memory_space<vmem>>, %arg9: memref<128x1024xbf16, #tpu.memory_space<vmem>>, %arg10: memref<1x1024xf32, #tpu.memory_space<vmem>>, %arg11: memref<1x1x1024xf32, #tpu.memory_space<vmem>>, %arg12: memref<8x1024xf32, #tpu.memory_space<vmem>>) attributes {dimension_semantics = [#tpu.dimension_semantics<parallel>, #tpu.dimension_semantics<parallel>, #tpu.dimension_semantics<arbitrary>], iteration_bounds = array<i64: 2, 1, 1>, scalar_prefetch = 1 : i64, scratch_operands = 1 : i64, tpu.core_type = #tpu.core_type<tc>, window_params = [{transform_indices = @transform_0, window_bounds = array<i64: 1, 256, 64>}, {pipeline_mode = #tpu.pipeline_mode<synchronous>, transform_indices = @transform_1, window_bounds = array<i64: 64, 64>}, {pipeline_mode = #tpu.pipeline_mode<synchronous>, transform_indices = @transform_2, window_bounds = array<i64: 1, 64>}, {pipeline_mode = #tpu.pipeline_mode<synchronous>, transform_indices = @transform_3, window_bounds = array<i64: 64, 128>}, {pipeline_mode = #tpu.pipeline_mode<synchronous>, transform_indices = @transform_4, window_bounds = array<i64: 1, 128>}, {pipeline_mode = #tpu.pipeline_mode<synchronous>, transform_indices = @transform_5, window_bounds = array<i64: 128, 1024>}, {pipeline_mode = #tpu.pipeline_mode<synchronous>, transform_indices = @transform_6, window_bounds = array<i64: 1, 1024>}, {transform_indices = @transform_7, window_bounds = array<i64: 1, 1, 1024>}]} {
    %c0_i32 = arith.constant 0 : i32
    %0 = arith.cmpi eq, %arg2, %c0_i32 : i32
    %1 = arith.extui %0 : i1 to i32
    %c0_i32_0 = arith.constant 0 : i32
    %2 = arith.cmpi ne, %1, %c0_i32_0 : i32
    scf.if %2 {
      %cst_50 = arith.constant 0xFF800000 : f32
      %78 = vector.broadcast %cst_50 : f32 to vector<8x1024xf32>
      %c0_51 = arith.constant 0 : index
      %c0_52 = arith.constant 0 : index
      %79 = vector.load %arg12[%c0_51, %c0_52] : memref<8x1024xf32, #tpu.memory_space<vmem>>, vector<8x1024xf32>
      tpu.vector_store %arg12[%c0_51, %c0_52], %78 {strides = array<i32>} : memref<8x1024xf32, #tpu.memory_space<vmem>>, vector<8x1024xf32>,
    } else {
    }
    %c0 = arith.constant 0 : index
    %c0_1 = arith.constant 0 : index
    %c0_2 = arith.constant 0 : index
    %3 = vector.load %arg4[%c0, %c0_1, %c0_2] : memref<1x256x64xf32, #tpu.memory_space<vmem>>, vector<1x256x64xf32>
    %4 = vector.shape_cast %3 : vector<1x256x64xf32> to vector<256x64xf32>
    %5 = arith.truncf %4 : vector<256x64xf32> to vector<256x64xbf16>
    %c0_3 = arith.constant 0 : index
    %c0_4 = arith.constant 0 : index
    %6 = vector.load %arg5[%c0_3, %c0_4] : memref<64x64xbf16, #tpu.memory_space<vmem>>, vector<64x64xbf16>
    %cst = arith.constant dense<0.000000e+00> : vector<256x64xf32>
    %7 = tpu.matmul %5, %6, %cst {dimension_numbers = #tpu.dot_dimension_numbers<[1], [0], [0], [1], [0, 0, 1, 1], [], []>} : vector<256x64xbf16>, vector<64x64xbf16>, vector<256x64xf32> -> vector<256x64xf32>
    %c0_5 = arith.constant 0 : index
    %c0_6 = arith.constant 0 : index
    %8 = vector.load %arg6[%c0_5, %c0_6] : memref<1x64xf32, #tpu.memory_space<vmem>>, vector<1x64xf32>
    %9 = vector.broadcast %8 : vector<1x64xf32> to vector<256x64xf32>
    %10 = arith.addf %7, %9 : vector<256x64xf32>
    %cst_7 = arith.constant 0.000000e+00 : f32
    %11 = vector.broadcast %cst_7 : f32 to vector<256x64xf32>
    %12 = arith.maximumf %10, %11 : vector<256x64xf32>
    %13 = arith.truncf %12 : vector<256x64xf32> to vector<256x64xbf16>
    %c0_8 = arith.constant 0 : index
    %c0_9 = arith.constant 0 : index
    %14 = vector.load %arg7[%c0_8, %c0_9] : memref<64x128xbf16, #tpu.memory_space<vmem>>, vector<64x128xbf16>
    %cst_10 = arith.constant dense<0.000000e+00> : vector<256x128xf32>
    %15 = tpu.matmul %13, %14, %cst_10 {dimension_numbers = #tpu.dot_dimension_numbers<[1], [0], [0], [1], [0, 0, 1, 1], [], []>} : vector<256x64xbf16>, vector<64x128xbf16>, vector<256x128xf32> -> vector<256x128xf32>
    %c0_11 = arith.constant 0 : index
    %c0_12 = arith.constant 0 : index
    %16 = vector.load %arg8[%c0_11, %c0_12] : memref<1x128xf32, #tpu.memory_space<vmem>>, vector<1x128xf32>
    %17 = vector.broadcast %16 : vector<1x128xf32> to vector<256x128xf32>
    %18 = arith.addf %15, %17 : vector<256x128xf32>
    %cst_13 = arith.constant 0.000000e+00 : f32
    %19 = vector.broadcast %cst_13 : f32 to vector<256x128xf32>
    %20 = arith.maximumf %18, %19 : vector<256x128xf32>
    %21 = arith.truncf %20 : vector<256x128xf32> to vector<256x128xbf16>
    %c1_i32 = arith.constant 1 : i32
    %22 = arith.muli %arg1, %c1_i32 : i32
    %23 = arith.addi %22, %arg2 : i32
    %c256_i32 = arith.constant 256 : i32
    %24 = arith.muli %23, %c256_i32 : i32
    %25 = tpu.iota {dimensions = array<i32: 0>} : vector<256x1xi32>
    %26 = vector.broadcast %24 : i32 to vector<256x1xi32>
    %27 = arith.addi %26, %25 : vector<256x1xi32>
    %c0_14 = arith.constant 0 : index
    %28 = memref.load %arg3[%c0_14] : memref<1xi32, #tpu.memory_space<smem>>
    %29 = vector.broadcast %28 : i32 to vector<256x1xi32>
    %30 = arith.cmpi slt, %27, %29 : vector<256x1xi32>
    %c0_15 = arith.constant 0 : index
    %c0_16 = arith.constant 0 : index
    %31 = vector.load %arg9[%c0_15, %c0_16] : memref<128x1024xbf16, #tpu.memory_space<vmem>>, vector<128x256xbf16>
    %cst_17 = arith.constant dense<0.000000e+00> : vector<256x256xf32>
    %32 = tpu.matmul %21, %31, %cst_17 {dimension_numbers = #tpu.dot_dimension_numbers<[1], [0], [0], [1], [0, 0, 1, 1], [], []>} : vector<256x128xbf16>, vector<128x256xbf16>, vector<256x256xf32> -> vector<256x256xf32>
    %cst_18 = arith.constant 0xFF800000 : f32
    %33 = vector.shape_cast %30 : vector<256x1xi1> to vector<256x1xi1>
    %34 = vector.broadcast %33 : vector<256x1xi1> to vector<256x256xi1>
    %35 = vector.broadcast %cst_18 : f32 to vector<256x256xf32>
    %36 = arith.select %34, %32, %35 : vector<256x256xi1>, vector<256x256xf32>
    %37 = vector.shape_cast %36 : vector<256x256xf32> to vector<32x8x256xf32>
    %cst_19 = arith.constant dense<0xFF800000> : vector<8x256xf32>
    %38 = vector.multi_reduction <maximumf>, %37, %cst_19 [0] : vector<32x8x256xf32> to vector<8x256xf32>
    %c0_20 = arith.constant 0 : index
    %c0_21 = arith.constant 0 : index
    %39 = vector.load %arg12[%c0_20, %c0_21] : memref<8x1024xf32, #tpu.memory_space<vmem>>, vector<8x256xf32>
    %40 = arith.maximumf %39, %38 : vector<8x256xf32>
    %c0_22 = arith.constant 0 : index
    %c0_23 = arith.constant 0 : index
    %41 = vector.load %arg12[%c0_22, %c0_23] : memref<8x1024xf32, #tpu.memory_space<vmem>>, vector<8x256xf32>
    tpu.vector_store %arg12[%c0_22, %c0_23], %40 {strides = array<i32>} : memref<8x1024xf32, #tpu.memory_space<vmem>>, vector<8x256xf32>,
    %c0_24 = arith.constant 0 : index
    %c256 = arith.constant 256 : index
    %42 = vector.load %arg9[%c0_24, %c256] : memref<128x1024xbf16, #tpu.memory_space<vmem>>, vector<128x256xbf16>
    %cst_25 = arith.constant dense<0.000000e+00> : vector<256x256xf32>
    %43 = tpu.matmul %21, %42, %cst_25 {dimension_numbers = #tpu.dot_dimension_numbers<[1], [0], [0], [1], [0, 0, 1, 1], [], []>} : vector<256x128xbf16>, vector<128x256xbf16>, vector<256x256xf32> -> vector<256x256xf32>
    %cst_26 = arith.constant 0xFF800000 : f32
    %44 = vector.shape_cast %30 : vector<256x1xi1> to vector<256x1xi1>
    %45 = vector.broadcast %44 : vector<256x1xi1> to vector<256x256xi1>
    %46 = vector.broadcast %cst_26 : f32 to vector<256x256xf32>
    %47 = arith.select %45, %43, %46 : vector<256x256xi1>, vector<256x256xf32>
    %48 = vector.shape_cast %47 : vector<256x256xf32> to vector<32x8x256xf32>
    %cst_27 = arith.constant dense<0xFF800000> : vector<8x256xf32>
    %49 = vector.multi_reduction <maximumf>, %48, %cst_27 [0] : vector<32x8x256xf32> to vector<8x256xf32>
    %c0_28 = arith.constant 0 : index
    %c256_29 = arith.constant 256 : index
    %50 = vector.load %arg12[%c0_28, %c256_29] : memref<8x1024xf32, #tpu.memory_space<vmem>>, vector<8x256xf32>
    %51 = arith.maximumf %50, %49 : vector<8x256xf32>
    %c0_30 = arith.constant 0 : index
    %c256_31 = arith.constant 256 : index
    %52 = vector.load %arg12[%c0_30, %c256_31] : memref<8x1024xf32, #tpu.memory_space<vmem>>, vector<8x256xf32>
    tpu.vector_store %arg12[%c0_30, %c256_31], %51 {strides = array<i32>} : memref<8x1024xf32, #tpu.memory_space<vmem>>, vector<8x256xf32>,
    %c0_32 = arith.constant 0 : index
    %c512 = arith.constant 512 : index
    %53 = vector.load %arg9[%c0_32, %c512] : memref<128x1024xbf16, #tpu.memory_space<vmem>>, vector<128x256xbf16>
    %cst_33 = arith.constant dense<0.000000e+00> : vector<256x256xf32>
    %54 = tpu.matmul %21, %53, %cst_33 {dimension_numbers = #tpu.dot_dimension_numbers<[1], [0], [0], [1], [0, 0, 1, 1], [], []>} : vector<256x128xbf16>, vector<128x256xbf16>, vector<256x256xf32> -> vector<256x256xf32>
    %cst_34 = arith.constant 0xFF800000 : f32
    %55 = vector.shape_cast %30 : vector<256x1xi1> to vector<256x1xi1>
    %56 = vector.broadcast %55 : vector<256x1xi1> to vector<256x256xi1>
    %57 = vector.broadcast %cst_34 : f32 to vector<256x256xf32>
    %58 = arith.select %56, %54, %57 : vector<256x256xi1>, vector<256x256xf32>
    %59 = vector.shape_cast %58 : vector<256x256xf32> to vector<32x8x256xf32>
    %cst_35 = arith.constant dense<0xFF800000> : vector<8x256xf32>
    %60 = vector.multi_reduction <maximumf>, %59, %cst_35 [0] : vector<32x8x256xf32> to vector<8x256xf32>
    %c0_36 = arith.constant 0 : index
    %c512_37 = arith.constant 512 : index
    %61 = vector.load %arg12[%c0_36, %c512_37] : memref<8x1024xf32, #tpu.memory_space<vmem>>, vector<8x256xf32>
    %62 = arith.maximumf %61, %60 : vector<8x256xf32>
    %c0_38 = arith.constant 0 : index
    %c512_39 = arith.constant 512 : index
    %63 = vector.load %arg12[%c0_38, %c512_39] : memref<8x1024xf32, #tpu.memory_space<vmem>>, vector<8x256xf32>
    tpu.vector_store %arg12[%c0_38, %c512_39], %62 {strides = array<i32>} : memref<8x1024xf32, #tpu.memory_space<vmem>>, vector<8x256xf32>,
    %c0_40 = arith.constant 0 : index
    %c768 = arith.constant 768 : index
    %64 = vector.load %arg9[%c0_40, %c768] : memref<128x1024xbf16, #tpu.memory_space<vmem>>, vector<128x256xbf16>
    %cst_41 = arith.constant dense<0.000000e+00> : vector<256x256xf32>
    %65 = tpu.matmul %21, %64, %cst_41 {dimension_numbers = #tpu.dot_dimension_numbers<[1], [0], [0], [1], [0, 0, 1, 1], [], []>} : vector<256x128xbf16>, vector<128x256xbf16>, vector<256x256xf32> -> vector<256x256xf32>
    %cst_42 = arith.constant 0xFF800000 : f32
    %66 = vector.shape_cast %30 : vector<256x1xi1> to vector<256x1xi1>
    %67 = vector.broadcast %66 : vector<256x1xi1> to vector<256x256xi1>
    %68 = vector.broadcast %cst_42 : f32 to vector<256x256xf32>
    %69 = arith.select %67, %65, %68 : vector<256x256xi1>, vector<256x256xf32>
    %70 = vector.shape_cast %69 : vector<256x256xf32> to vector<32x8x256xf32>
    %cst_43 = arith.constant dense<0xFF800000> : vector<8x256xf32>
    %71 = vector.multi_reduction <maximumf>, %70, %cst_43 [0] : vector<32x8x256xf32> to vector<8x256xf32>
    %c0_44 = arith.constant 0 : index
    %c768_45 = arith.constant 768 : index
    %72 = vector.load %arg12[%c0_44, %c768_45] : memref<8x1024xf32, #tpu.memory_space<vmem>>, vector<8x256xf32>
    %73 = arith.maximumf %72, %71 : vector<8x256xf32>
    %c0_46 = arith.constant 0 : index
    %c768_47 = arith.constant 768 : index
    %74 = vector.load %arg12[%c0_46, %c768_47] : memref<8x1024xf32, #tpu.memory_space<vmem>>, vector<8x256xf32>
    tpu.vector_store %arg12[%c0_46, %c768_47], %73 {strides = array<i32>} : memref<8x1024xf32, #tpu.memory_space<vmem>>, vector<8x256xf32>,
    %c0_i32_48 = arith.constant 0 : i32
    %75 = arith.cmpi eq, %arg2, %c0_i32_48 : i32
    %76 = arith.extui %75 : i1 to i32
    %c0_i32_49 = arith.constant 0 : i32
    %77 = arith.cmpi ne, %76, %c0_i32_49 : i32
    scf.if %77 {
      %c0_50 = arith.constant 0 : index
      %c0_51 = arith.constant 0 : index
      %78 = vector.load %arg12[%c0_50, %c0_51] : memref<8x1024xf32, #tpu.memory_space<vmem>>, vector<8x1024xf32>
      %cst_52 = arith.constant dense<0xFF800000> : vector<1024xf32>
      %79 = vector.multi_reduction <maximumf>, %78, %cst_52 [0] : vector<8x1024xf32> to vector<1024xf32>
      %80 = vector.shape_cast %79 : vector<1024xf32> to vector<1x1024xf32>
      %c0_53 = arith.constant 0 : index
      %c0_54 = arith.constant 0 : index
      %81 = vector.load %arg10[%c0_53, %c0_54] : memref<1x1024xf32, #tpu.memory_space<vmem>>, vector<1x1024xf32>
      %82 = arith.addf %80, %81 : vector<1x1024xf32>
      %cst_55 = arith.constant 0.000000e+00 : f32
      %83 = vector.broadcast %cst_55 : f32 to vector<1x1024xf32>
      %84 = arith.maximumf %82, %83 : vector<1x1024xf32>
      %85 = vector.shape_cast %84 : vector<1x1024xf32> to vector<1x1x1024xf32>
      %c0_56 = arith.constant 0 : index
      %c0_57 = arith.constant 0 : index
      %c0_58 = arith.constant 0 : index
      %86 = vector.load %arg11[%c0_56, %c0_57, %c0_58] : memref<1x1x1024xf32, #tpu.memory_space<vmem>>, vector<1x1x1024xf32>
      tpu.vector_store %arg11[%c0_56, %c0_57, %c0_58], %85 {strides = array<i32>} : memref<1x1x1024xf32, #tpu.memory_space<vmem>>, vector<1x1x1024xf32>,
    } else {
    }
    return
  }
  func.func @transform_0(%arg0: i32, %arg1: i32, %arg2: i32, %arg3: memref<1xi32, #tpu.memory_space<smem>>) -> (i32, i32, i32) {
    %c1_i32 = arith.constant 1 : i32
    %0 = arith.muli %arg1, %c1_i32 : i32
    %1 = arith.addi %0, %arg2 : i32
    %c0_i32 = arith.constant 0 : i32
    %c0_i32_0 = arith.constant 0 : i32
    return %arg0, %1, %c0_i32 : i32, i32, i32
  }
  func.func @transform_1(%arg0: i32, %arg1: i32, %arg2: i32, %arg3: memref<1xi32, #tpu.memory_space<smem>>) -> (i32, i32) {
    %c0_i32 = arith.constant 0 : i32
    %c0_i32_0 = arith.constant 0 : i32
    %c0_i32_1 = arith.constant 0 : i32
    return %c0_i32, %c0_i32_0 : i32, i32
  }
  func.func @transform_2(%arg0: i32, %arg1: i32, %arg2: i32, %arg3: memref<1xi32, #tpu.memory_space<smem>>) -> (i32, i32) {
    %c0_i32 = arith.constant 0 : i32
    %c0_i32_0 = arith.constant 0 : i32
    %c0_i32_1 = arith.constant 0 : i32
    return %c0_i32, %c0_i32_0 : i32, i32
  }
  func.func @transform_3(%arg0: i32, %arg1: i32, %arg2: i32, %arg3: memref<1xi32, #tpu.memory_space<smem>>) -> (i32, i32) {
    %c0_i32 = arith.constant 0 : i32
    %c0_i32_0 = arith.constant 0 : i32
    %c0_i32_1 = arith.constant 0 : i32
    return %c0_i32, %c0_i32_0 : i32, i32
  }
  func.func @transform_4(%arg0: i32, %arg1: i32, %arg2: i32, %arg3: memref<1xi32, #tpu.memory_space<smem>>) -> (i32, i32) {
    %c0_i32 = arith.constant 0 : i32
    %c0_i32_0 = arith.constant 0 : i32
    %c0_i32_1 = arith.constant 0 : i32
    return %c0_i32, %c0_i32_0 : i32, i32
  }
  func.func @transform_5(%arg0: i32, %arg1: i32, %arg2: i32, %arg3: memref<1xi32, #tpu.memory_space<smem>>) -> (i32, i32) {
    %c0_i32 = arith.constant 0 : i32
    %c0_i32_0 = arith.constant 0 : i32
    %c0_i32_1 = arith.constant 0 : i32
    return %c0_i32, %c0_i32_0 : i32, i32
  }
  func.func @transform_6(%arg0: i32, %arg1: i32, %arg2: i32, %arg3: memref<1xi32, #tpu.memory_space<smem>>) -> (i32, i32) {
    %c0_i32 = arith.constant 0 : i32
    %c0_i32_0 = arith.constant 0 : i32
    %c0_i32_1 = arith.constant 0 : i32
    return %c0_i32, %c0_i32_0 : i32, i32
  }
  func.func @transform_7(%arg0: i32, %arg1: i32, %arg2: i32, %arg3: memref<1xi32, #tpu.memory_space<smem>>) -> (i32, i32, i32) {
    %c0_i32 = arith.constant 0 : i32
    %c0_i32_0 = arith.constant 0 : i32
    return %arg0, %arg1, %c0_i32 : i32, i32, i32
  }
}

</mosaic_0001>

<bundles_post_ra>
// kernel: tpu_custom_call.1
= control target key start
LH: loop header
LB: loop body
LE: loop exit
PB: predicated region body
PF: predicated region fallthrough
CT: control target
= control target key end

     0   :  { %s4919_s0 = inlined_call_operand.<no memory space> [shape: s32[1], index: 0, kind: input, shape index: {}]   ;;  %s4920_s1 = inlined_call_operand.vmem [shape: f32[2,256,64], index: 1, kind: input, shape index: {}]   ;;  %s4921_s2 = inlined_call_operand.vmem [shape: bf16[64,64], index: 2, kind: input, shape index: {}]   ;;  %s4922_s3 = inlined_call_operand.vmem [shape: f32[1,64], index: 3, kind: input, shape index: {}]   ;;  %s4923_s4 = inlined_call_operand.vmem [shape: bf16[64,128], index: 4, kind: input, shape index: {}]   ;;  %s4924_s5 = inlined_call_operand.vmem [shape: f32[1,128], index: 5, kind: input, shape index: {}]   ;;  %s4925_s6 = inlined_call_operand.vmem [shape: bf16[128,1024], index: 6, kind: input, shape index: {}]   ;;  %s4926_s7 = inlined_call_operand.vmem [shape: f32[1,1024], index: 7, kind: input, shape index: {}]   ;;  %s4927_s8 = inlined_call_operand.hbm [shape: f32[2,1,1024], index: 8, kind: output, shape index: {}]  }
   0x1   :  { %13 = sst [smem:[#allocation4]] %s4919_s0 }
   0x2   :  { %14 = vsyncpa [#allocation6], 0 }
   0x3   :  { %16 = vsyncpa [#allocation6 + $0x1], 0  ;;  %s3536_s29 = smov 0   ;;  %s3538_s30 = smov 0  }
   0x4   :  { %s3540_s9 = smov 0   ;;  %s3542_s10 = smov 0  }
   0x5   :  { %s3544_s11 = smov 0   ;;  %s3546_s12 = smov 0  }
   0x6 LB: > { %s3099_s0 = sadd.s32 4294967295, %s3483_s12   ;;  %s3100_s13 = sadd.s32 4294967294, %s3483_s12   ;;  %s3483_s12 = sphi %s3546_s12, %s22_s12   ;;  %s3479_s11 = sphi %s3544_s11, %s5086_s11   ;;  %s3475_s10 = sphi %s3542_s10, %s5085_s10   ;;  %s3471_s9 = sphi %s3540_s9, %s5084_s9   ;;  %s3467_s30 = sphi %s3538_s30, %s5083_s30   ;;  %s3463_s29 = sphi %s3536_s29, %s5082_s29  }
   0x7   : > { %s41_s14 = sadd.s32 1, %s3479_s11  ;;  %s206_s15 = sadd.s32 1, %s3471_s9 }
   0x8   : > { %p43_p0 = scmp.ge.s32.totalorder %s41_s14, 2  ;;  %p216_p1 = scmp.ne.s32.totalorder %s3471_s9, %s3467_s30 }
   0x9   : > { %p217_p2 = scmp.eq.s32.totalorder %s3099_s0, 1  ;;  %p222_p3 = scmp.ne.s32.totalorder %s3467_s30, %s3463_s29 }
   0xa   : > { %s5088_s14 = smov (%p43_p0, %s41_s14), 0  ;;  %p223_p5 = scmp.eq.s32.totalorder %s3100_s13, 1 }
   0xb   : > { %p3576_p4 = por %p217_p2, %p216_p1  ;;  %s201_s17 = ssub.s32 %s3479_s11, %s5088_s14 }
   0xc   : > { %p3103_p6 = scmp.ge.s32.totalorder %s3483_s12, 1  ;;  %p204_p7 = scmp.eq.s32.totalorder %s201_s17, 0 }
   0xd   : > { %p3583_p8 = por %p223_p5, %p222_p3  ;;  %p274_p9 = scmp.lt.s32.totalorder %s3483_s12, 3 }
   0xe   : > { %s3589_s19 = scalar_select %p204_p7, %s3471_s9, %s206_s15  }
   0xf   : > { %p275_p10 = pnand %p3103_p6, %p274_p9 }
  0x11   : > { %278 = sbr.rel (%p275_p10) target bundleno = 992 (0x3e0), region = 48 }
  0x18   : > { %v3397_v0 = vld [vmem:[%s4921_s2] sm:$0xff]   ;;  %p313_p11 = scmp.lt.s32.totalorder %s3475_s10, 1  ;;  %v3398_v1 = vld [vmem:[%s4921_s2 + $0x8] sm:$0xff]   ;;  %v3399_v2 = vld [vmem:[%s4921_s2 + $0x10] sm:$0xff]   ;;  %vm423_vm0 = vcmask 523264   ;;  %s1045_s13 = sld [smem:[#allocation4]] }
  0x19   : > { %3260 = vmatprep.subr.bf16.mxu0 %v3397_v0  ;;  %v3401_v3 = vld [vmem:[%s4923_s4] sm:$0xff]   ;;  %v3402_v4 = vld [vmem:[%s4923_s4 + $0x8] sm:$0xff]   ;;  %v3400_v8 = vld [vmem:[%s4921_s2 + $0x18] sm:$0xff]   ;;  %s308_s20 = sand.u32 1, %s3467_s30   ;;  %s3219_s22 = sshll.u32 %s3475_s10, 7 }
  0x1a   : > { %s314_s24 = scalar_select %p313_p11, %s3475_s10, 1  ;;  %3261 = vmatpush3.bf16.msra.mxu0 %v3397_v0  ;;  %3300 = vmatprep.subr.bf16.mxu1 %v3401_v3  ;;  %v3403_v54 = vld [vmem:[%s4923_s4 + $0x10] sm:$0xff]   ;;  %v3404_v55 = vld [vmem:[%s4923_s4 + $0x18] sm:$0xff]   ;;  %v1079_v56 = vld [vmem:[%s4925_s6] sm:$0xff] }
  0x1b   : > { %3262 = vmatprep.subr.bf16.mxu0 %v3398_v1  ;;  %3301 = vmatpush3.bf16.msra.mxu1 %v3401_v3  ;;  %v1080_v57 = vld [vmem:[%s4925_s6 + $0x20] sm:$0xff]  ;;  %v3679_v58 = vld [vmem:[%s4925_s6 + $0x8] sm:$0xff]  ;;  %s3104_s21 = sshll.u32 %s308_s20, 3  ;;  %s3004_s10 = scalar_lea.sflag [#allocation6], %s308_s20 }
  0x1c   : > { %s3218_s27 = sshll.u32 %s314_s24, 8  ;;  %3302 = vmatprep.subr.bf16.mxu1 %v3402_v4  ;;  %v3149_v59 = vcombine.low %v1079_v56, %v1080_v57  ;;  %v3150_v60 = vcombine.high %v1079_v56, %v1080_v57  ;;  %v3684_v61 = vld [vmem:[%s4925_s6 + $0x28] sm:$0xff]  ;;  %v1081_v62 = vld [vmem:[%s4925_s6 + $0x40] sm:$0xff]  ;;  %s310_s23 = scalar_lea.vmem [#allocation5], %s3104_s21 }
  0x1d   : > { %s3608_s17 = scalar_lea.vmem %s4920_s1, %s3218_s27  ;;  %v1082_v63 = vld [vmem:[%s4925_s6 + $0x60] sm:$0xff]  ;;  %v3165_v0 = vcombine.low %v3679_v58, %v3684_v61  ;;  %s3020_s24 = sshll.u32 %s310_s23, 4  ;;  %s4874_s24 = int_to_ptr.vmem [resolvable:$true] %s3020_s24 }
  0x1e   : > { %v336_v5 = vld [vmem:[%s3608_s17] sm:$0xff]  ;;  %v337_v6 = vld [vmem:[%s3608_s17 + $0x8] sm:$0xff]  ;;  %3263 = vmatpush3.bf16.msra.mxu0 %v3398_v1  ;;  %v338_v9 = vld [vmem:[%s3608_s17 + $0x10] sm:$0xff]  ;;  %v3166_v1 = vcombine.high %v3679_v58, %v3684_v61  ;;  %s4872_s27 = scalar_lea.hbm %s4927_s8, %s3219_s22  ;;  %s3405_s28 = scalar_lea.vmem %s4874_s24, 128 }
  0x1f   : > { %v368_v7 = vpack.c.bf16 %v337_v6, %v336_v5  ;;  %3264 = vmatprep.subr.bf16.mxu0 %v3399_v2  ;;  %v339_v10 = vld [vmem:[%s3608_s17 + $0x18] sm:$0xff]  ;;  %3303 = vmatpush3.bf16.msra.mxu1 %v3402_v4  ;;  %v340_v11 = vld [vmem:[%s3608_s17 + $0x20] sm:$0xff]  ;;  %v341_v12 = vld [vmem:[%s3608_s17 + $0x28] sm:$0xff]  ;;  %v3151_v5 = vcombine.low %v1081_v62, %v1082_v63  ;;  %p3406_p12 = scmp.ne.s32.totalorder %s4874_s24, %s3405_s28  ;;  %s3487_s0 = smov [#allocation5]  }
  0x20   : > { %v369_v13 = vpack.c.bf16 %v339_v10, %v338_v9  ;;  %v370_v14 = vpack.c.bf16 %v341_v12, %v340_v11  ;;  %v342_v15 = vld [vmem:[%s3608_s17 + $0x30] sm:$0xff]  ;;  %v343_v16 = vld [vmem:[%s3608_s17 + $0x38] sm:$0xff]  ;;  %v344_v17 = vld [vmem:[%s3608_s17 + $0x40] sm:$0xff]  ;;  %3304 = vmatprep.subr.bf16.mxu1 %v3403_v54 }
  0x21   : > { %3268 = vmatprep.mubr.msk.bf16.mxu0 %vm423_vm0, %v368_v7  ;;  %v345_v18 = vld [vmem:[%s3608_s17 + $0x48] sm:$0xff]  ;;  %v371_v19 = vpack.c.bf16 %v343_v16, %v342_v15  ;;  %v346_v21 = vld [vmem:[%s3608_s17 + $0x50] sm:$0xff]  ;;  %v347_v22 = vld [vmem:[%s3608_s17 + $0x58] sm:$0xff]  ;;  %p3407_p13 = pnand %p3406_p12, %p3576_p4 }
  0x22   : > { %3265 = vmatpush3.bf16.msra.mxu0 %v3399_v2  ;;  %v372_v20 = vpack.c.bf16 %v345_v18, %v344_v17  ;;  %v348_v23 = vld [vmem:[%s3608_s17 + $0x60] sm:$0xff]  ;;  %v349_v24 = vld [vmem:[%s3608_s17 + $0x68] sm:$0xff]  ;;  %v373_v25 = vpack.c.bf16 %v347_v22, %v346_v21  ;;  %v350_v27 = vld [vmem:[%s3608_s17 + $0x70] sm:$0xff]  ;;  %v3152_v2 = vcombine.high %v1081_v62, %v1082_v63 }
  0x23   : > { %3266 = vmatprep.subr.bf16.mxu0 %v3400_v8  ;;  %v374_v26 = vpack.c.bf16 %v349_v24, %v348_v23  ;;  %v351_v28 = vld [vmem:[%s3608_s17 + $0x78] sm:$0xff]  ;;  %v352_v29 = vld [vmem:[%s3608_s17 + $0x80] sm:$0xff]  ;;  %v353_v30 = vld [vmem:[%s3608_s17 + $0x88] sm:$0xff]  ;;  %3305 = vmatpush3.bf16.msra.mxu1 %v3403_v54  ;;  %p3408_p0 = pneg %p3407_p13 }
  0x24   : > { %v375_v31 = vpack.c.bf16 %v351_v28, %v350_v27  ;;  %v376_v32 = vpack.c.bf16 %v353_v30, %v352_v29  ;;  %v354_v33 = vld [vmem:[%s3608_s17 + $0x90] sm:$0xff]  ;;  %v355_v34 = vld [vmem:[%s3608_s17 + $0x98] sm:$0xff]  ;;  %v356_v35 = vld [vmem:[%s3608_s17 + $0xa0] sm:$0xff]  ;;  %3306 = vmatprep.subr.bf16.mxu1 %v3404_v55 }
  0x25   : > { %v357_v36 = vld [vmem:[%s3608_s17 + $0xa8] sm:$0xff]  ;;  %v377_v37 = vpack.c.bf16 %v355_v34, %v354_v33  ;;  %v358_v39 = vld [vmem:[%s3608_s17 + $0xb0] sm:$0xff]  ;;  %v359_v40 = vld [vmem:[%s3608_s17 + $0xb8] sm:$0xff] }
  0x26   : > { %3267 = vmatpush3.bf16.msra.mxu0 %v3400_v8  ;;  %v378_v38 = vpack.c.bf16 %v357_v36, %v356_v35  ;;  %v360_v41 = vld [vmem:[%s3608_s17 + $0xc0] sm:$0xff]  ;;  %v361_v42 = vld [vmem:[%s3608_s17 + $0xc8] sm:$0xff]  ;;  %v379_v43 = vpack.c.bf16 %v359_v40, %v358_v39  ;;  %v362_v45 = vld [vmem:[%s3608_s17 + $0xd0] sm:$0xff] }
  0x27   : > { %v380_v44 = vpack.c.bf16 %v361_v42, %v360_v41  ;;  %v363_v46 = vld [vmem:[%s3608_s17 + $0xd8] sm:$0xff]  ;;  %v364_v47 = vld [vmem:[%s3608_s17 + $0xe0] sm:$0xff]  ;;  %v365_v48 = vld [vmem:[%s3608_s17 + $0xe8] sm:$0xff]  ;;  %3307 = vmatpush3.bf16.msra.mxu1 %v3404_v55  ;;  %1175 = vmatprep.subr.bf16.mxu0 %v3150_v60 }
  0x28   : > { %v381_v49 = vpack.c.bf16 %v363_v46, %v362_v45  ;;  %v382_v50 = vpack.c.bf16 %v365_v48, %v364_v47  ;;  %v366_v51 = vld [vmem:[%s3608_s17 + $0xf0] sm:$0xff]  ;;  %v367_v52 = vld [vmem:[%s3608_s17 + $0xf8] sm:$0xff]  ;;  %v1083_v3 = vld [vmem:[%s4925_s6 + $0x80] sm:$0xff]  ;;  %1660 = vmatprep.subr.bf16.mxu1 %v3166_v1 }
  0x29   : > { %3269 = vmatmul.mubr.msk.bf16.vlgmr.msra.gmra.mrb[0].mxu0 %vm423_vm0, %v369_v13  ;;  %v383_v53 = vpack.c.bf16 %v367_v52, %v366_v51  ;;  %v1084_v4 = vld [vmem:[%s4925_s6 + $0xa0] sm:$0xff]  ;;  %v1568_v47 = vld [vmem:[%s4925_s6 + $0x88] sm:$0xff] }
  0x2a   : > { %3272 = vmatprep.mubr.msk.bf16.mxu0 %vm423_vm0, %v370_v14  ;;  %1176 = vmatpush1.bf16.msra.mxu0 %v3149_v59  ;;  %v3154_v6 = vcombine.high %v1083_v3, %v1084_v4  ;;  %v1085_v7 = vld [vmem:[%s4925_s6 + $0xc0] sm:$0xff]  ;;  %v3153_v9 = vcombine.low %v1083_v3, %v1084_v4  ;;  %v1569_v48 = vld [vmem:[%s4925_s6 + $0xa8] sm:$0xff] }
  0x2b   : > { %1177 = vmatprep.subr.bf16.mxu0 %v3152_v2  ;;  %v1086_v8 = vld [vmem:[%s4925_s6 + $0xe0] sm:$0xff]  ;;  %v3170_v56 = vcombine.high %v1568_v47, %v1569_v48  ;;  %v1570_v59 = vld [vmem:[%s4925_s6 + $0xc8] sm:$0xff]  ;;  %v3169_v2 = vcombine.low %v1568_v47, %v1569_v48 }
  0x2c   : > { %v3156_v10 = vcombine.high %v1085_v7, %v1086_v8  ;;  %v1087_v11 = vld [vmem:[%s4925_s6 + $0x100] sm:$0xff]  ;;  %v3155_v13 = vcombine.low %v1085_v7, %v1086_v8  ;;  %v1571_v60 = vld [vmem:[%s4925_s6 + $0xe8] sm:$0xff] }
  0x2d   : > { %v1088_v12 = vld [vmem:[%s4925_s6 + $0x120] sm:$0xff] }
  0x2e   : > { %1178 = vmatpush1.bf16.msra.mxu0 %v3151_v5  ;;  %v3158_v14 = vcombine.high %v1087_v11, %v1088_v12  ;;  %v1089_v15 = vld [vmem:[%s4925_s6 + $0x140] sm:$0xff]  ;;  %v3157_v17 = vcombine.low %v1087_v11, %v1088_v12  ;;  %v1572_v5 = vld [vmem:[%s4925_s6 + $0x108] sm:$0xff]  ;;  %v3171_v12 = vcombine.low %v1570_v59, %v1571_v60 }
  0x2f   : > { %1179 = vmatprep.subr.bf16.mxu0 %v3154_v6  ;;  %v1090_v16 = vld [vmem:[%s4925_s6 + $0x160] sm:$0xff]  ;;  %v1573_v6 = vld [vmem:[%s4925_s6 + $0x128] sm:$0xff] }
  0x30   : > { %v3160_v18 = vcombine.high %v1089_v15, %v1090_v16  ;;  %v3159_v21 = vcombine.low %v1089_v15, %v1090_v16  ;;  %v3729_v24 = vld [vmem:[%s4922_s3] ss:$0 sm:$0xff]  ;;  %v1574_v16 = vld [vmem:[%s4925_s6 + $0x148] sm:$0xff] }
  0x31   : > { %3273 = vmatmul.mubr.msk.bf16.gmra.mrb[4].mxu0 %vm423_vm0, %v371_v19  ;;  %v1091_v19 = vld [vmem:[%s4925_s6 + $0x180] sm:$0xff] }
  0x32   : > { %3276 = vmatprep.mubr.msk.bf16.mxu0 %vm423_vm0, %v372_v20  ;;  %1180 = vmatpush1.bf16.msra.mxu0 %v3153_v9  ;;  %v1092_v20 = vld [vmem:[%s4925_s6 + $0x1a0] sm:$0xff] }
  0x33   : > { %1181 = vmatprep.subr.bf16.mxu0 %v3156_v10  ;;  %v3162_v22 = vcombine.high %v1091_v19, %v1092_v20  ;;  %v3161_v23 = vcombine.low %v1091_v19, %v1092_v20 }
  0x36   : > { %1182 = vmatpush1.bf16.msra.mxu0 %v3155_v13 }
  0x37   : > { %1183 = vmatprep.subr.bf16.mxu0 %v3158_v14  ;;  %v3174_v14 = vcombine.high %v1572_v5, %v1573_v6 }
  0x39   : > { %3277 = vmatmul.mubr.msk.bf16.gmra.mrb[8].mxu0 %vm423_vm0, %v373_v25 }
  0x3a   : > { %3280 = vmatprep.mubr.msk.bf16.mxu0 %vm423_vm0, %v374_v26  ;;  %1184 = vmatpush1.bf16.msra.mxu0 %v3157_v17  ;;  %v1575_v17 = vld [vmem:[%s4925_s6 + $0x168] sm:$0xff] }
  0x3b   : > { %1185 = vmatprep.subr.bf16.mxu0 %v3160_v18 }
  0x3e   : > { %1186 = vmatpush1.bf16.msra.mxu0 %v3159_v21  ;;  %v3173_v21 = vcombine.low %v1572_v5, %v1573_v6 }
  0x3f   : > { %1187 = vmatprep.subr.bf16.mxu0 %v3162_v22 }
  0x41   : > { %3281 = vmatmul.mubr.msk.bf16.gmra.mrb[12].mxu0 %vm423_vm0, %v375_v31 }
  0x42   : > { %3284 = vmatprep.mubr.msk.bf16.mxu0 %vm423_vm0, %v376_v32  ;;  %1188 = vmatpush1.bf16.msra.mxu0 %v3161_v23 }
  0x49   : > { %3285 = vmatmul.mubr.msk.bf16.gmra.mrb[16].mxu0 %vm423_vm0, %v377_v37  ;;  %v1566_v37 = vld [vmem:[%s4925_s6 + $0x48] sm:$0xff] }
  0x4a   : > { %3288 = vmatprep.mubr.msk.bf16.mxu0 %vm423_vm0, %v378_v38  ;;  %v1567_v38 = vld [vmem:[%s4925_s6 + $0x68] sm:$0xff] }
  0x4b   : > { %v3167_v54 = vcombine.low %v1566_v37, %v1567_v38 }
  0x51   : > { %3289 = vmatmul.mubr.msk.bf16.gmra.mrb[20].mxu0 %vm423_vm0, %v379_v43 }
  0x52   : > { %3292 = vmatprep.mubr.msk.bf16.mxu0 %vm423_vm0, %v380_v44  ;;  %v3168_v44 = vcombine.high %v1566_v37, %v1567_v38 }
  0x59   : > { %3293 = vmatmul.mubr.msk.bf16.gmra.mrb[24].mxu0 %vm423_vm0, %v381_v49 }
  0x5a   : > { %3296 = vmatprep.mubr.msk.bf16.mxu0 %vm423_vm0, %v382_v50 }
  0x61   : > { %3297 = vmatmul.mubr.msk.bf16.gmra.mrb[28].mxu0 %vm423_vm0, %v383_v53 }
  0xfc   : > { %v3270_v25 = vpop.f32.mrb[0].mxu0 }
  0xfd   : > { %v515_v26 = vadd.f32 %v3270_v25, %v3729_v24  ;;  %v506_v27 = vpop.f32.mrb[1].mxu0  ;;  %v3176_v25 = vcombine.high %v1574_v16, %v1575_v17 }
  0xfe   : > { %v507_v28 = vadd.f32 %v3729_v24, %v506_v27  ;;  %v3271_v29 = vpop.f32.mrb[2].mxu0 }
  0xff   : > { %v518_v30 = vadd.f32 %v3271_v29, %v3729_v24  ;;  %v509_v31 = vpop.f32.mrb[3].mxu0  ;;  %v635_v33 = vmax.f32 %v515_v26, 0.0  ;;  %v1577_v29 = vld [vmem:[%s4925_s6 + $0x1a8] sm:$0xff] }
 0x100   : > { %v510_v32 = vadd.f32 %v3729_v24, %v509_v31  ;;  %v633_v35 = vmax.f32 %v507_v28, 0.0  ;;  %v1576_v28 = vld [vmem:[%s4925_s6 + $0x188] sm:$0xff] }
 0x101   : > { %v636_v34 = vmax.f32 %v518_v30, 0.0  ;;  %v3178_v37 = vcombine.high %v1576_v28, %v1577_v29 }
 0x102   : > { %v634_v36 = vmax.f32 %v510_v32, 0.0 }
 0x103   : > { %v666_v39 = vpack.c.bf16 %v636_v34, %v635_v33 }
 0x104   : > { %v3274_v40 = vpop.f32.mrb[4].mxu0  ;;  %v665_v41 = vpack.c.bf16 %v634_v36, %v633_v35  ;;  %v3175_v35 = vcombine.low %v1574_v16, %v1575_v17 }
 0x105   : > { %v531_v42 = vadd.f32 %v3274_v40, %v3729_v24  ;;  %v522_v43 = vpop.f32.mrb[5].mxu0 }
 0x106   : > { %v523_v45 = vadd.f32 %v3729_v24, %v522_v43  ;;  %3308 = vmatprep.mubr.msk.bf16.mxu1 %vm423_vm0, %v665_v41  ;;  %v3275_v46 = vpop.f32.mrb[6].mxu0 }
 0x107   : > { %v639_v49 = vmax.f32 %v531_v42, 0.0  ;;  %v534_v50 = vadd.f32 %v3275_v46, %v3729_v24  ;;  %3309 = vmatmul.mubr.msk.bf16.vlgmr.msra.gmra.mrb[0].mxu1 %vm423_vm0, %v666_v39  ;;  %v525_v51 = vpop.f32.mrb[7].mxu0  ;;  %v3177_v42 = vcombine.low %v1576_v28, %v1577_v29 }
 0x108   : > { %v637_v52 = vmax.f32 %v523_v45, 0.0  ;;  %v526_v53 = vadd.f32 %v3729_v24, %v525_v51  ;;  %1661 = vmatpush1.bf16.msra.mxu1 %v3165_v0  ;;  %v3172_v0 = vcombine.high %v1570_v59, %v1571_v60 }
 0x109   : > { %v640_v55 = vmax.f32 %v534_v50, 0.0  ;;  %1662 = vmatprep.subr.bf16.mxu1 %v3168_v44 }
 0x10a   : > { %v638_v57 = vmax.f32 %v526_v53, 0.0 }
 0x10b   : > { %v668_v62 = vpack.c.bf16 %v640_v55, %v639_v49 }
 0x10c   : > { %v667_v63 = vpack.c.bf16 %v638_v57, %v637_v52  ;;  %v3278_v1 = vpop.f32.mrb[8].mxu0  ;;  %1663 = vmatpush1.bf16.msra.mxu1 %v3167_v54 }
 0x10d   : > { %v547_v58 = vadd.f32 %v3278_v1, %v3729_v24  ;;  %v538_v61 = vpop.f32.mrb[9].mxu0  ;;  %1664 = vmatprep.subr.bf16.mxu1 %v3170_v56 }
 0x10e   : > { %3312 = vmatprep.mubr.msk.bf16.mxu1 %vm423_vm0, %v667_v63  ;;  %v539_v3 = vadd.f32 %v3729_v24, %v538_v61  ;;  %v3279_v4 = vpop.f32.mrb[10].mxu0 }
 0x10f   : > { %3313 = vmatmul.mubr.msk.bf16.gmra.mrb[4].mxu1 %vm423_vm0, %v668_v62  ;;  %v643_v7 = vmax.f32 %v547_v58, 0.0  ;;  %v550_v8 = vadd.f32 %v3279_v4, %v3729_v24  ;;  %v541_v9 = vpop.f32.mrb[11].mxu0 }
 0x110   : > { %v641_v10 = vmax.f32 %v539_v3, 0.0  ;;  %v542_v11 = vadd.f32 %v3729_v24, %v541_v9  ;;  %1665 = vmatpush1.bf16.msra.mxu1 %v3169_v2 }
 0x111   : > { %v644_v13 = vmax.f32 %v550_v8, 0.0  ;;  %1666 = vmatprep.subr.bf16.mxu1 %v3172_v0 }
 0x112   : > { %v642_v15 = vmax.f32 %v542_v11, 0.0 }
 0x113   : > { %v670_v18 = vpack.c.bf16 %v644_v13, %v643_v7 }
 0x114   : > { %v669_v19 = vpack.c.bf16 %v642_v15, %v641_v10  ;;  %v3282_v20 = vpop.f32.mrb[12].mxu0  ;;  %1667 = vmatpush1.bf16.msra.mxu1 %v3171_v12 }
 0x115   : > { %v563_v22 = vadd.f32 %v3282_v20, %v3729_v24  ;;  %v554_v23 = vpop.f32.mrb[13].mxu0  ;;  %1668 = vmatprep.subr.bf16.mxu1 %v3174_v14 }
 0x116   : > { %3316 = vmatprep.mubr.msk.bf16.mxu1 %vm423_vm0, %v669_v19  ;;  %v555_v26 = vadd.f32 %v3729_v24, %v554_v23  ;;  %v3283_v27 = vpop.f32.mrb[14].mxu0 }
 0x117   : > { %3317 = vmatmul.mubr.msk.bf16.gmra.mrb[8].mxu1 %vm423_vm0, %v670_v18  ;;  %v647_v30 = vmax.f32 %v563_v22, 0.0  ;;  %v566_v31 = vadd.f32 %v3283_v27, %v3729_v24  ;;  %v557_v32 = vpop.f32.mrb[15].mxu0 }
 0x118   : > { %v645_v33 = vmax.f32 %v555_v26, 0.0  ;;  %v558_v34 = vadd.f32 %v3729_v24, %v557_v32  ;;  %1669 = vmatpush1.bf16.msra.mxu1 %v3173_v21 }
 0x119   : > { %v648_v36 = vmax.f32 %v566_v31, 0.0  ;;  %1670 = vmatprep.subr.bf16.mxu1 %v3176_v25 }
 0x11a   : > { %v646_v38 = vmax.f32 %v558_v34, 0.0 }
 0x11b   : > { %v672_v39 = vpack.c.bf16 %v648_v36, %v647_v30  ;;  %v1094_v36 = vld [vmem:[%s4925_s6 + $0x1e0] sm:$0xff] }
 0x11c   : > { %v671_v40 = vpack.c.bf16 %v646_v38, %v645_v33  ;;  %v3286_v41 = vpop.f32.mrb[16].mxu0  ;;  %1671 = vmatpush1.bf16.msra.mxu1 %v3175_v35  ;;  %v1093_v35 = vld [vmem:[%s4925_s6 + $0x1c0] sm:$0xff] }
 0x11d   : > { %v579_v43 = vadd.f32 %v3286_v41, %v3729_v24  ;;  %v570_v44 = vpop.f32.mrb[17].mxu0  ;;  %1672 = vmatprep.subr.bf16.mxu1 %v3178_v37  ;;  %v3163_v37 = vcombine.low %v1093_v35, %v1094_v36  ;;  %v3164_v38 = vcombine.high %v1093_v35, %v1094_v36 }
 0x11e   : > { %3320 = vmatprep.mubr.msk.bf16.mxu1 %vm423_vm0, %v671_v40  ;;  %v571_v45 = vadd.f32 %v3729_v24, %v570_v44  ;;  %v3287_v46 = vpop.f32.mrb[18].mxu0  ;;  %v1986_v44 = vld [vmem:[%s4925_s6 + $0x30] sm:$0xff] }
 0x11f   : > { %3321 = vmatmul.mubr.msk.bf16.gmra.mrb[12].mxu1 %vm423_vm0, %v672_v39  ;;  %v651_v47 = vmax.f32 %v579_v43, 0.0  ;;  %v582_v48 = vadd.f32 %v3287_v46, %v3729_v24  ;;  %v573_v49 = vpop.f32.mrb[19].mxu0  ;;  %v1579_v39 = vld [vmem:[%s4925_s6 + $0x1e8] sm:$0xff]  ;;  %1189 = vmatprep.subr.bf16.mxu0 %v3164_v38  ;;  %v1985_v43 = vld [vmem:[%s4925_s6 + $0x10] sm:$0xff] }
 0x120   : > { %v649_v50 = vmax.f32 %v571_v45, 0.0  ;;  %v574_v51 = vadd.f32 %v3729_v24, %v573_v49  ;;  %1673 = vmatpush1.bf16.msra.mxu1 %v3177_v42  ;;  %1190 = vmatpush1.bf16.msra.mxu0 %v3163_v37  ;;  %v3485_v42 = vmov 0   ;;  %v2406_v45 = vld [vmem:[%s4925_s6 + $0x18] sm:$0xff]  ;;  %v3181_v46 = vcombine.low %v1985_v43, %v1986_v44 }
 0x121   : > { %v652_v52 = vmax.f32 %v582_v48, 0.0  ;;  %1207 = vmatprep.mubr.bf16.mxu0 %v3485_v42  ;;  %v2407_v48 = vld [vmem:[%s4925_s6 + $0x38] sm:$0xff] }
 0x122   : > { %v650_v53 = vmax.f32 %v574_v51, 0.0  ;;  %v3197_v49 = vcombine.low %v2406_v45, %v2407_v48  ;;  %v3847_v51 = vld [vmem:[%s4924_s5] ss:$0 sm:$0xff] }
 0x123   : > { %v674_v54 = vpack.c.bf16 %v652_v52, %v651_v47  ;;  %v3182_v47 = vcombine.high %v1985_v43, %v1986_v44 }
 0x124   : > { %v673_v55 = vpack.c.bf16 %v650_v53, %v649_v50  ;;  %v3290_v56 = vpop.f32.mrb[20].mxu0  ;;  %v3198_v50 = vcombine.high %v2406_v45, %v2407_v48  ;;  %v1994_v45 = vld [vmem:[%s4925_s6 + $0x130] sm:$0xff] }
 0x125   : > { %v595_v57 = vadd.f32 %v3290_v56, %v3729_v24  ;;  %v586_v59 = vpop.f32.mrb[21].mxu0  ;;  %2081 = vmatprep.subr.bf16.mxu0 %v3182_v47  ;;  %v2415_v47 = vld [vmem:[%s4925_s6 + $0x138] sm:$0xff] }
 0x126   : > { %3324 = vmatprep.mubr.msk.bf16.mxu1 %vm423_vm0, %v673_v55  ;;  %v587_v60 = vadd.f32 %v3729_v24, %v586_v59  ;;  %v3291_v62 = vpop.f32.mrb[22].mxu0 }
 0x127   : > { %3325 = vmatmul.mubr.msk.bf16.gmra.mrb[16].mxu1 %vm423_vm0, %v674_v54  ;;  %v655_v63 = vmax.f32 %v595_v57, 0.0  ;;  %v598_v1 = vadd.f32 %v3291_v62, %v3729_v24  ;;  %v589_v2 = vpop.f32.mrb[23].mxu0 }
 0x128   : > { %v653_v58 = vmax.f32 %v587_v60, 0.0  ;;  %v590_v61 = vadd.f32 %v3729_v24, %v589_v2 }
 0x129   : > { %v656_v0 = vmax.f32 %v598_v1, 0.0  ;;  %v1987_v1 = vld [vmem:[%s4925_s6 + $0x50] sm:$0xff] }
 0x12a   : > { %v654_v3 = vmax.f32 %v590_v61, 0.0  ;;  %v1988_v61 = vld [vmem:[%s4925_s6 + $0x70] sm:$0xff] }
 0x12b   : > { %v676_v4 = vpack.c.bf16 %v656_v0, %v655_v63  ;;  %v2408_v0 = vld [vmem:[%s4925_s6 + $0x58] sm:$0xff] }
 0x12c   : > { %v675_v5 = vpack.c.bf16 %v654_v3, %v653_v58  ;;  %v3294_v6 = vpop.f32.mrb[24].mxu0  ;;  %v2409_v3 = vld [vmem:[%s4925_s6 + $0x78] sm:$0xff] }
 0x12d   : > { %v611_v7 = vadd.f32 %v3294_v6, %v3729_v24  ;;  %v602_v8 = vpop.f32.mrb[25].mxu0 }
 0x12e   : > { %3328 = vmatprep.mubr.msk.bf16.mxu1 %vm423_vm0, %v675_v5  ;;  %v603_v9 = vadd.f32 %v3729_v24, %v602_v8  ;;  %v3295_v10 = vpop.f32.mrb[26].mxu0 }
 0x12f   : > { %3329 = vmatmul.mubr.msk.bf16.gmra.mrb[20].mxu1 %vm423_vm0, %v676_v4  ;;  %v659_v11 = vmax.f32 %v611_v7, 0.0  ;;  %v614_v12 = vadd.f32 %v3295_v10, %v3729_v24  ;;  %v605_v13 = vpop.f32.mrb[27].mxu0  ;;  %v1989_v7 = vld [vmem:[%s4925_s6 + $0x90] sm:$0xff]  ;;  %v3184_v10 = vcombine.high %v1987_v1, %v1988_v61 }
 0x130   : > { %v657_v14 = vmax.f32 %v603_v9, 0.0  ;;  %v606_v15 = vadd.f32 %v3729_v24, %v605_v13  ;;  %v2410_v13 = vld [vmem:[%s4925_s6 + $0x98] sm:$0xff] }
 0x131   : > { %v660_v16 = vmax.f32 %v614_v12, 0.0  ;;  %v1990_v12 = vld [vmem:[%s4925_s6 + $0xb0] sm:$0xff] }
 0x132   : > { %v658_v17 = vmax.f32 %v606_v15, 0.0  ;;  %v3185_v36 = vcombine.low %v1989_v7, %v1990_v12 }
 0x133   : > { %v678_v18 = vpack.c.bf16 %v660_v16, %v659_v11  ;;  %v3200_v11 = vcombine.high %v2408_v0, %v2409_v3 }
 0x134   : > { %v677_v19 = vpack.c.bf16 %v658_v17, %v657_v14  ;;  %v3298_v20 = vpop.f32.mrb[28].mxu0  ;;  %v2411_v14 = vld [vmem:[%s4925_s6 + $0xb8] sm:$0xff] }
 0x135   : > { %v627_v21 = vadd.f32 %v3298_v20, %v3729_v24  ;;  %v618_v22 = vpop.f32.mrb[29].mxu0  ;;  %v3183_v20 = vcombine.low %v1987_v1, %v1988_v61  ;;  %v2416_v1 = vld [vmem:[%s4925_s6 + $0x158] sm:$0xff] }
 0x136   : > { %3332 = vmatprep.mubr.msk.bf16.mxu1 %vm423_vm0, %v677_v19  ;;  %v619_v23 = vadd.f32 %v3729_v24, %v618_v22  ;;  %v3299_v25 = vpop.f32.mrb[30].mxu0 }
 0x137   : > { %3333 = vmatmul.mubr.msk.bf16.gmra.mrb[24].mxu1 %vm423_vm0, %v678_v18  ;;  %v663_v26 = vmax.f32 %v627_v21, 0.0  ;;  %v630_v27 = vadd.f32 %v3299_v25, %v3729_v24  ;;  %v621_v28 = vpop.f32.mrb[31].mxu0  ;;  %v3199_v21 = vcombine.low %v2408_v0, %v2409_v3  ;;  %v3186_v25 = vcombine.high %v1989_v7, %v1990_v12 }
 0x138   : > { %v661_v29 = vmax.f32 %v619_v23, 0.0  ;;  %v622_v30 = vadd.f32 %v3729_v24, %v621_v28  ;;  %v1578_v24 = vld [vmem:[%s4925_s6 + $0x1c8] sm:$0xff]  ;;  %v1991_v28 = vld [vmem:[%s4925_s6 + $0xd0] sm:$0xff] }
 0x139   : > { %v664_v31 = vmax.f32 %v630_v27, 0.0  ;;  %v3179_v40 = vcombine.low %v1578_v24, %v1579_v39  ;;  %v3180_v41 = vcombine.high %v1578_v24, %v1579_v39  ;;  %v3201_v24 = vcombine.low %v2410_v13, %v2411_v14 }
 0x13a   : > { %v662_v32 = vmax.f32 %v622_v30, 0.0  ;;  %v1992_v30 = vld [vmem:[%s4925_s6 + $0xf0] sm:$0xff] }
 0x13b   : > { %v680_v33 = vpack.c.bf16 %v664_v31, %v663_v26  ;;  %1674 = vmatprep.subr.bf16.mxu1 %v3180_v41  ;;  %v3202_v26 = vcombine.high %v2410_v13, %v2411_v14  ;;  %v2412_v31 = vld [vmem:[%s4925_s6 + $0xd8] sm:$0xff]  ;;  %v3188_v39 = vcombine.high %v1991_v28, %v1992_v30  ;;  %v1993_v41 = vld [vmem:[%s4925_s6 + $0x110] sm:$0xff] }
 0x13c   : > { %v679_v34 = vpack.c.bf16 %v662_v32, %v661_v29  ;;  %1675 = vmatpush1.bf16.msra.mxu1 %v3179_v40  ;;  %v2413_v32 = vld [vmem:[%s4925_s6 + $0xf8] sm:$0xff]  ;;  %v3189_v3 = vcombine.low %v1993_v41, %v1994_v45  ;;  %v1998_v14 = vld [vmem:[%s4925_s6 + $0x1b0] sm:$0xff] }
 0x13d   : > { %2502 = vmatprep.subr.bf16.mxu1 %v3198_v50  ;;  %v3204_v40 = vcombine.high %v2412_v31, %v2413_v32 }
 0x13e   : > { %3336 = vmatprep.mubr.msk.bf16.mxu1 %vm423_vm0, %v679_v34 }
 0x13f   : > { %3337 = vmatmul.mubr.msk.bf16.gmra.mrb[28].mxu1 %vm423_vm0, %v680_v33 }
 0x140   : > { %1692 = vmatprep.mubr.bf16.mxu1 %v3485_v42 }
 0x1da   : > { %v3310_v52 = vpop.f32.mrb[0].mxu1 }
 0x1db   : > { %v811_v53 = vadd.f32 %v3310_v52, %v3847_v51  ;;  %v802_v54 = vpop.f32.mrb[1].mxu1 }
 0x1dc   : > { %v803_v55 = vadd.f32 %v3847_v51, %v802_v54  ;;  %v3311_v56 = vpop.f32.mrb[2].mxu1  ;;  %v3187_v54 = vcombine.low %v1991_v28, %v1992_v30  ;;  %v1999_v28 = vld [vmem:[%s4925_s6 + $0x1d0] sm:$0xff] }
 0x1dd   : > { %v814_v57 = vadd.f32 %v3311_v56, %v3847_v51  ;;  %v805_v59 = vpop.f32.mrb[3].mxu1  ;;  %v931_v62 = vmax.f32 %v811_v53, 0.0  ;;  %v2000_v30 = vld [vmem:[%s4925_s6 + $0x1f0] sm:$0xff] }
 0x1de   : > { %v806_v60 = vadd.f32 %v3847_v51, %v805_v59  ;;  %v929_v2 = vmax.f32 %v803_v55, 0.0  ;;  %v3203_v55 = vcombine.low %v2412_v31, %v2413_v32  ;;  %v2420_v31 = vld [vmem:[%s4925_s6 + $0x1d8] sm:$0xff] }
 0x1df   : > { %v932_v63 = vmax.f32 %v814_v57, 0.0  ;;  %v3190_v57 = vcombine.high %v1993_v41, %v1994_v45  ;;  %v2421_v32 = vld [vmem:[%s4925_s6 + $0x1f8] sm:$0xff]  ;;  %v3196_v41 = vcombine.high %v1999_v28, %v2000_v30 }
 0x1e0   : > { %v930_v58 = vmax.f32 %v806_v60, 0.0  ;;  %v1995_v60 = vld [vmem:[%s4925_s6 + $0x150] sm:$0xff] }
 0x1e1   : > { %v3865_v4 = vpack.c.bf16 %v932_v63, %v931_v62  ;;  %v1996_v63 = vld [vmem:[%s4925_s6 + $0x170] sm:$0xff] }
 0x1e2   : > { %v3867_v5 = vpack.c.bf16 %v930_v58, %v929_v2  ;;  %v3314_v6 = vpop.f32.mrb[4].mxu1  ;;  %v2417_v2 = vld [vmem:[%s4925_s6 + $0x178] sm:$0xff] }
 0x1e3   : > { %v827_v8 = vadd.f32 %v3314_v6, %v3847_v51  ;;  %v818_v9 = vpop.f32.mrb[5].mxu1 }
 0x1e4   : > { %v819_v15 = vadd.f32 %v3847_v51, %v818_v9  ;;  %1208 = vmatmul.mubr.bf16.vlgmr.msra.gmra.mrb[32].mxu0 %v3867_v5  ;;  %1693 = vmatmul.mubr.bf16.vlgmr.msra.gmra.mrb[32].mxu1 %v3867_v5  ;;  %v3315_v16 = vpop.f32.mrb[6].mxu1  ;;  %v3192_v9 = vcombine.high %v1995_v60, %v1996_v63 }
 0x1e5   : > { %v935_v17 = vmax.f32 %v827_v8, 0.0  ;;  %2082 = vmatpush1.bf16.msra.mxu0 %v3181_v46  ;;  %2503 = vmatpush1.bf16.msra.mxu1 %v3197_v49  ;;  %v830_v18 = vadd.f32 %v3315_v16, %v3847_v51  ;;  %v821_v19 = vpop.f32.mrb[7].mxu1  ;;  %v2414_v46 = vld [vmem:[%s4925_s6 + $0x118] sm:$0xff] }
 0x1e6   : > { %v933_v22 = vmax.f32 %v819_v15, 0.0  ;;  %v822_v23 = vadd.f32 %v3847_v51, %v821_v19  ;;  %1217 = vmatprep.mubr.bf16.mxu0 %v3485_v42  ;;  %1702 = vmatprep.mubr.bf16.mxu1 %v3485_v42  ;;  %v3206_v59 = vcombine.high %v2414_v46, %v2415_v47  ;;  %v3205_v6 = vcombine.low %v2414_v46, %v2415_v47  ;;  %v2418_v15 = vld [vmem:[%s4925_s6 + $0x198] sm:$0xff] }
 0x1e7   : > { %v936_v27 = vmax.f32 %v830_v18, 0.0  ;;  %2083 = vmatprep.subr.bf16.mxu0 %v3184_v10  ;;  %2504 = vmatprep.subr.bf16.mxu1 %v3200_v11  ;;  %v3208_v10 = vcombine.high %v2416_v1, %v2417_v2  ;;  %v1997_v11 = vld [vmem:[%s4925_s6 + $0x190] sm:$0xff]  ;;  %v2419_v16 = vld [vmem:[%s4925_s6 + $0x1b8] sm:$0xff] }
 0x1e8   : > { %v934_v29 = vmax.f32 %v822_v23, 0.0  ;;  %v3207_v23 = vcombine.low %v2416_v1, %v2417_v2 }
 0x1e9   : > { %v3901_v33 = vpack.c.bf16 %v936_v27, %v935_v17  ;;  %2084 = vmatpush1.bf16.msra.mxu0 %v3183_v20  ;;  %2505 = vmatpush1.bf16.msra.mxu1 %v3199_v21  ;;  %v3210_v27 = vcombine.high %v2418_v15, %v2419_v16 }
 0x1ea   : > { %v3903_v34 = vpack.c.bf16 %v934_v29, %v933_v22  ;;  %v3318_v35 = vpop.f32.mrb[8].mxu1  ;;  %2085 = vmatprep.subr.bf16.mxu0 %v3186_v25  ;;  %2506 = vmatprep.subr.bf16.mxu1 %v3202_v26  ;;  %v3191_v22 = vcombine.low %v1995_v60, %v1996_v63  ;;  %v3194_v26 = vcombine.high %v1997_v11, %v1998_v14 }
 0x1eb   : > { %v843_v37 = vadd.f32 %v3318_v35, %v3847_v51  ;;  %v834_v38 = vpop.f32.mrb[9].mxu1 }
 0x1ec   : > { %1218 = vmatmul.mubr.bf16.gmra.mrb[36].mxu0 %v3865_v4  ;;  %1703 = vmatmul.mubr.bf16.gmra.mrb[36].mxu1 %v3865_v4  ;;  %v835_v43 = vadd.f32 %v3847_v51, %v834_v38  ;;  %v3319_v44 = vpop.f32.mrb[10].mxu1  ;;  %v3209_v38 = vcombine.low %v2418_v15, %v2419_v16 }
 0x1ed   : > { %v939_v48 = vmax.f32 %v843_v37, 0.0  ;;  %1227 = vmatprep.mubr.bf16.mxu0 %v3485_v42  ;;  %1712 = vmatprep.mubr.bf16.mxu1 %v3485_v42  ;;  %v846_v49 = vadd.f32 %v3319_v44, %v3847_v51  ;;  %v837_v50 = vpop.f32.mrb[11].mxu1  ;;  %v3193_v37 = vcombine.low %v1997_v11, %v1998_v14 }
 0x1ee   : > { %v937_v52 = vmax.f32 %v835_v43, 0.0  ;;  %v838_v53 = vadd.f32 %v3847_v51, %v837_v50  ;;  %2086 = vmatpush1.bf16.msra.mxu0 %v3185_v36  ;;  %2507 = vmatpush1.bf16.msra.mxu1 %v3201_v24  ;;  %v3212_v43 = vcombine.high %v2420_v31, %v2421_v32 }
 0x1ef   : > { %v940_v56 = vmax.f32 %v846_v49, 0.0  ;;  %2087 = vmatprep.subr.bf16.mxu0 %v3188_v39  ;;  %2508 = vmatprep.subr.bf16.mxu1 %v3204_v40 }
 0x1f0   : > { %v938_v62 = vmax.f32 %v838_v53, 0.0  ;;  %v3211_v53 = vcombine.low %v2420_v31, %v2421_v32 }
 0x1f1   : > { %v3937_v58 = vpack.c.bf16 %v940_v56, %v939_v48 }
 0x1f2   : > { %v3939_v61 = vpack.c.bf16 %v938_v62, %v937_v52  ;;  %v3322_v0 = vpop.f32.mrb[12].mxu1  ;;  %2088 = vmatpush1.bf16.msra.mxu0 %v3187_v54  ;;  %2509 = vmatpush1.bf16.msra.mxu1 %v3203_v55  ;;  %v3195_v52 = vcombine.low %v1999_v28, %v2000_v30 }
 0x1f3   : > { %v859_v7 = vadd.f32 %v3322_v0, %v3847_v51  ;;  %v850_v8 = vpop.f32.mrb[13].mxu1  ;;  %2089 = vmatprep.subr.bf16.mxu0 %v3190_v57  ;;  %2510 = vmatprep.subr.bf16.mxu1 %v3206_v59 }
 0x1f4   : > { %1228 = vmatmul.mubr.bf16.gmra.mrb[40].mxu0 %v3903_v34  ;;  %1713 = vmatmul.mubr.bf16.gmra.mrb[40].mxu1 %v3903_v34  ;;  %v851_v12 = vadd.f32 %v3847_v51, %v850_v8  ;;  %v3323_v13 = vpop.f32.mrb[14].mxu1 }
 0x1f5   : > { %1237 = vmatprep.mubr.bf16.mxu0 %v3485_v42  ;;  %1722 = vmatprep.mubr.bf16.mxu1 %v3485_v42  ;;  %v943_v17 = vmax.f32 %v859_v7, 0.0  ;;  %v862_v18 = vadd.f32 %v3323_v13, %v3847_v51  ;;  %v853_v19 = vpop.f32.mrb[15].mxu1 }
 0x1f6   : > { %v941_v20 = vmax.f32 %v851_v12, 0.0  ;;  %v854_v21 = vadd.f32 %v3847_v51, %v853_v19  ;;  %2090 = vmatpush1.bf16.msra.mxu0 %v3189_v3  ;;  %2511 = vmatpush1.bf16.msra.mxu1 %v3205_v6 }
 0x1f7   : > { %v944_v25 = vmax.f32 %v862_v18, 0.0  ;;  %2091 = vmatprep.subr.bf16.mxu0 %v3192_v9  ;;  %2512 = vmatprep.subr.bf16.mxu1 %v3208_v10 }
 0x1f8   : > { %v942_v29 = vmax.f32 %v854_v21, 0.0 }
 0x1f9   : > { %v3973_v35 = vpack.c.bf16 %v944_v25, %v943_v17 }
 0x1fa   : > { %v3975_v36 = vpack.c.bf16 %v942_v29, %v941_v20  ;;  %v3326_v24 = vpop.f32.mrb[16].mxu1  ;;  %2092 = vmatpush1.bf16.msra.mxu0 %v3191_v22  ;;  %2513 = vmatpush1.bf16.msra.mxu1 %v3207_v23 }
 0x1fb   : > { %v875_v39 = vadd.f32 %v3326_v24, %v3847_v51  ;;  %v866_v40 = vpop.f32.mrb[17].mxu1  ;;  %2093 = vmatprep.subr.bf16.mxu0 %v3194_v26  ;;  %2514 = vmatprep.subr.bf16.mxu1 %v3210_v27 }
 0x1fc   : > { %1238 = vmatmul.mubr.bf16.gmra.mrb[44].mxu0 %v3901_v33  ;;  %1723 = vmatmul.mubr.bf16.gmra.mrb[44].mxu1 %v3901_v33  ;;  %v867_v44 = vadd.f32 %v3847_v51, %v866_v40  ;;  %v3327_v45 = vpop.f32.mrb[18].mxu1 }
 0x1fd   : > { %1247 = vmatprep.mubr.bf16.mxu0 %v3485_v42  ;;  %1732 = vmatprep.mubr.bf16.mxu1 %v3485_v42  ;;  %v947_v46 = vmax.f32 %v875_v39, 0.0  ;;  %v878_v47 = vadd.f32 %v3327_v45, %v3847_v51  ;;  %v869_v48 = vpop.f32.mrb[19].mxu1 }
 0x1fe   : > { %v945_v49 = vmax.f32 %v867_v44, 0.0  ;;  %v870_v50 = vadd.f32 %v3847_v51, %v869_v48  ;;  %2094 = vmatpush1.bf16.msra.mxu0 %v3193_v37  ;;  %2515 = vmatpush1.bf16.msra.mxu1 %v3209_v38 }
 0x1ff   : > { %v948_v54 = vmax.f32 %v878_v47, 0.0  ;;  %2095 = vmatprep.subr.bf16.mxu0 %v3196_v41  ;;  %2516 = vmatprep.subr.bf16.mxu1 %v3212_v43 }
 0x200   : > { %v946_v55 = vmax.f32 %v870_v50, 0.0 }
 0x201   : > { %v3985_v56 = vpack.c.bf16 %v948_v54, %v947_v46 }
 0x202   : > { %v3987_v57 = vpack.c.bf16 %v946_v55, %v945_v49  ;;  %v3330_v59 = vpop.f32.mrb[20].mxu1  ;;  %2096 = vmatpush1.bf16.msra.mxu0 %v3195_v52  ;;  %2517 = vmatpush1.bf16.msra.mxu1 %v3211_v53 }
 0x203   : > { %v891_v60 = vadd.f32 %v3330_v59, %v3847_v51  ;;  %v882_v62 = vpop.f32.mrb[21].mxu1 }
 0x204   : > { %1248 = vmatmul.mubr.bf16.gmra.mrb[48].mxu0 %v3939_v61  ;;  %1733 = vmatmul.mubr.bf16.gmra.mrb[48].mxu1 %v3939_v61  ;;  %v883_v63 = vadd.f32 %v3847_v51, %v882_v62  ;;  %v3331_v1 = vpop.f32.mrb[22].mxu1 }
 0x205   : > { %1257 = vmatprep.mubr.bf16.mxu0 %v3485_v42  ;;  %1742 = vmatprep.mubr.bf16.mxu1 %v3485_v42  ;;  %v951_v2 = vmax.f32 %v891_v60, 0.0  ;;  %v894_v0 = vadd.f32 %v3331_v1, %v3847_v51  ;;  %v885_v3 = vpop.f32.mrb[23].mxu1 }
 0x206   : > { %v949_v6 = vmax.f32 %v883_v63, 0.0  ;;  %v886_v7 = vadd.f32 %v3847_v51, %v885_v3 }
 0x207   : > { %v952_v8 = vmax.f32 %v894_v0, 0.0 }
 0x208   : > { %v950_v9 = vmax.f32 %v886_v7, 0.0 }
 0x209   : > { %v3997_v10 = vpack.c.bf16 %v952_v8, %v951_v2 }
 0x20a   : > { %v3999_v11 = vpack.c.bf16 %v950_v9, %v949_v6  ;;  %v3334_v12 = vpop.f32.mrb[24].mxu1 }
 0x20b   : > { %v907_v13 = vadd.f32 %v3334_v12, %v3847_v51  ;;  %v898_v14 = vpop.f32.mrb[25].mxu1 }
 0x20c   : > { %1258 = vmatmul.mubr.bf16.gmra.mrb[52].mxu0 %v3937_v58  ;;  %1743 = vmatmul.mubr.bf16.gmra.mrb[52].mxu1 %v3937_v58  ;;  %v899_v15 = vadd.f32 %v3847_v51, %v898_v14  ;;  %v3335_v16 = vpop.f32.mrb[26].mxu1 }
 0x20d   : > { %1267 = vmatprep.mubr.bf16.mxu0 %v3485_v42  ;;  %1752 = vmatprep.mubr.bf16.mxu1 %v3485_v42  ;;  %v955_v17 = vmax.f32 %v907_v13, 0.0  ;;  %v910_v18 = vadd.f32 %v3335_v16, %v3847_v51  ;;  %v901_v19 = vpop.f32.mrb[27].mxu1 }
 0x20e   : > { %v953_v20 = vmax.f32 %v899_v15, 0.0  ;;  %v902_v21 = vadd.f32 %v3847_v51, %v901_v19 }
 0x20f   : > { %v956_v22 = vmax.f32 %v910_v18, 0.0 }
 0x210   : > { %v954_v23 = vmax.f32 %v902_v21, 0.0 }
 0x211   : > { %v4009_v25 = vpack.c.bf16 %v956_v22, %v955_v17 }
 0x212   : > { %v4011_v26 = vpack.c.bf16 %v954_v23, %v953_v20  ;;  %v3338_v27 = vpop.f32.mrb[28].mxu1 }
 0x213   : > { %v923_v28 = vadd.f32 %v3338_v27, %v3847_v51  ;;  %v914_v29 = vpop.f32.mrb[29].mxu1 }
 0x214   : > { %1268 = vmatmul.mubr.bf16.gmra.mrb[56].mxu0 %v3975_v36  ;;  %1753 = vmatmul.mubr.bf16.gmra.mrb[56].mxu1 %v3975_v36  ;;  %v915_v30 = vadd.f32 %v3847_v51, %v914_v29  ;;  %v3339_v31 = vpop.f32.mrb[30].mxu1 }
 0x215   : > { %1277 = vmatprep.mubr.bf16.mxu0 %v3485_v42  ;;  %1762 = vmatprep.mubr.bf16.mxu1 %v3485_v42  ;;  %v959_v32 = vmax.f32 %v923_v28, 0.0  ;;  %v926_v24 = vadd.f32 %v3339_v31, %v3847_v51  ;;  %v917_v37 = vpop.f32.mrb[31].mxu1 }
 0x216   : > { %v957_v38 = vmax.f32 %v915_v30, 0.0  ;;  %v918_v39 = vadd.f32 %v3847_v51, %v917_v37  ;;  %v979_v51 = vlaneseq }
 0x217   : > { %v960_v40 = vmax.f32 %v926_v24, 0.0 }
 0x218   : > { %v958_v41 = vmax.f32 %v918_v39, 0.0 }
 0x219   : > { %v4021_v43 = vpack.c.bf16 %v960_v40, %v959_v32 }
 0x21a   : > { %v4023_v44 = vpack.c.bf16 %v958_v41, %v957_v38 }
 0x21c   : > { %1278 = vmatmul.mubr.bf16.gmra.mrb[60].mxu0 %v3973_v35  ;;  %1763 = vmatmul.mubr.bf16.gmra.mrb[60].mxu1 %v3973_v35 }
 0x21d   : > { %1287 = vmatprep.mubr.bf16.mxu0 %v3485_v42  ;;  %1772 = vmatprep.mubr.bf16.mxu1 %v3485_v42 }
 0x224   : > { %1288 = vmatmul.mubr.bf16.gmra.mrb[64].mxu0 %v3987_v57  ;;  %1773 = vmatmul.mubr.bf16.gmra.mrb[64].mxu1 %v3987_v57 }
 0x225   : > { %1297 = vmatprep.mubr.bf16.mxu0 %v3485_v42  ;;  %1782 = vmatprep.mubr.bf16.mxu1 %v3485_v42 }
 0x22c   : > { %1298 = vmatmul.mubr.bf16.gmra.mrb[68].mxu0 %v3985_v56  ;;  %1783 = vmatmul.mubr.bf16.gmra.mrb[68].mxu1 %v3985_v56 }
 0x22d   : > { %1307 = vmatprep.mubr.bf16.mxu0 %v3485_v42  ;;  %1792 = vmatprep.mubr.bf16.mxu1 %v3485_v42 }
 0x234   : > { %1308 = vmatmul.mubr.bf16.gmra.mrb[72].mxu0 %v3999_v11  ;;  %1793 = vmatmul.mubr.bf16.gmra.mrb[72].mxu1 %v3999_v11 }
 0x235   : > { %1317 = vmatprep.mubr.bf16.mxu0 %v3485_v42  ;;  %1802 = vmatprep.mubr.bf16.mxu1 %v3485_v42 }
 0x23c   : > { %1318 = vmatmul.mubr.bf16.gmra.mrb[76].mxu0 %v3997_v10  ;;  %1803 = vmatmul.mubr.bf16.gmra.mrb[76].mxu1 %v3997_v10 }
 0x23d   : > { %1327 = vmatprep.mubr.bf16.mxu0 %v3485_v42  ;;  %1812 = vmatprep.mubr.bf16.mxu1 %v3485_v42 }
 0x244   : > { %1328 = vmatmul.mubr.bf16.gmra.mrb[80].mxu0 %v4011_v26  ;;  %1813 = vmatmul.mubr.bf16.gmra.mrb[80].mxu1 %v4011_v26 }
 0x245   : > { %1337 = vmatprep.mubr.bf16.mxu0 %v3485_v42  ;;  %1822 = vmatprep.mubr.bf16.mxu1 %v3485_v42 }
 0x24c   : > { %1338 = vmatmul.mubr.bf16.gmra.mrb[84].mxu0 %v4009_v25  ;;  %1823 = vmatmul.mubr.bf16.gmra.mrb[84].mxu1 %v4009_v25 }
 0x24d   : > { %1347 = vmatprep.mubr.bf16.mxu0 %v3485_v42  ;;  %1832 = vmatprep.mubr.bf16.mxu1 %v3485_v42 }
 0x254   : > { %1348 = vmatmul.mubr.bf16.gmra.mrb[88].mxu0 %v4023_v44  ;;  %1833 = vmatmul.mubr.bf16.gmra.mrb[88].mxu1 %v4023_v44 }
 0x255   : > { %1357 = vmatprep.mubr.bf16.mxu0 %v3485_v42  ;;  %1842 = vmatprep.mubr.bf16.mxu1 %v3485_v42 }
 0x25c   : > { %1358 = vmatmul.mubr.bf16.gmra.mrb[92].mxu0 %v4021_v43  ;;  %1843 = vmatmul.mubr.bf16.gmra.mrb[92].mxu1 %v4021_v43 }
 0x25d   : > { %2113 = vmatprep.mubr.bf16.mxu0 %v3485_v42  ;;  %2534 = vmatprep.mubr.bf16.mxu1 %v3485_v42 }
 0x264   : > { %2114 = vmatmul.mubr.bf16.vlgmr.msra.gmra.mrb[96].mxu0 %v3867_v5  ;;  %2535 = vmatmul.mubr.bf16.vlgmr.msra.gmra.mrb[96].mxu1 %v3867_v5 }
 0x265   : > { %2123 = vmatprep.mubr.bf16.mxu0 %v3485_v42  ;;  %2544 = vmatprep.mubr.bf16.mxu1 %v3485_v42 }
 0x26c   : > { %2124 = vmatmul.mubr.bf16.gmra.mrb[100].mxu0 %v3865_v4  ;;  %2545 = vmatmul.mubr.bf16.gmra.mrb[100].mxu1 %v3865_v4  ;;  %v4103_v4 = vshrl.u32 %v979_v51, 7 }
 0x26d   : > { %2133 = vmatprep.mubr.bf16.mxu0 %v3485_v42  ;;  %2554 = vmatprep.mubr.bf16.mxu1 %v3485_v42 }
 0x26e   : > { %v982_v46 = vadd.s32 16, %v4103_v4  ;;  %v983_v47 = vadd.s32 24, %v4103_v4  ;;  %v985_v59 = vadd.s32 40, %v4103_v4  ;;  %v986_v51 = vadd.s32 48, %v4103_v4 }
 0x274   : > { %2134 = vmatmul.mubr.bf16.gmra.mrb[104].mxu0 %v3903_v34  ;;  %2555 = vmatmul.mubr.bf16.gmra.mrb[104].mxu1 %v3903_v34  ;;  %v4107_v34 = vstv %s1045_s13  ;;  %s3409_s13 = sshll.u32 %s3487_s0, 4  ;;  %s3410_s13 = int_to_ptr.vmem [resolvable:$false] %s3409_s13 }
 0x275   : > { %2143 = vmatprep.mubr.bf16.mxu0 %v3485_v42  ;;  %2564 = vmatprep.mubr.bf16.mxu1 %v3485_v42  ;;  %vm4114_vm1 = vcmp.lt.s32.totalorder %v4103_v4, %v4107_v34  ;;  %vm4126_vm3 = vcmp.lt.s32.totalorder %v982_v46, %v4107_v34  ;;  %vm4131_vm4 = vcmp.lt.s32.totalorder %v983_v47, %v4107_v34  ;;  %s3411_s15 = scalar_lea.vmem %s3410_s13, 256  ;;  %p3412_p1 = scmp.lt.s32.totalorder %s4874_s24, %s3410_s13 }
 0x276   : > { %vm4181_vm6 = vcmp.lt.s32.totalorder %v985_v59, %v4107_v34  ;;  %vm4206_vm7 = vcmp.lt.s32.totalorder %v986_v51, %v4107_v34  ;;  %p3413_p2 = scmp.lt.s32.totalorder %s3411_s15, %s3405_s28 }
 0x278   : > { %p3414_p3 = por %p3413_p2, %p3412_p1 }
 0x27a   : > { %p3415_p5 = pnand %p3414_p3, %p3408_p0 }
 0x27c   : > { %2144 = vmatmul.mubr.bf16.gmra.mrb[108].mxu0 %v3901_v33  ;;  %2565 = vmatmul.mubr.bf16.gmra.mrb[108].mxu1 %v3901_v33 }
 0x27d   : > { %2153 = vmatprep.mubr.bf16.mxu0 %v3485_v42  ;;  %2574 = vmatprep.mubr.bf16.mxu1 %v3485_v42 }
 0x284   : > { %2154 = vmatmul.mubr.bf16.gmra.mrb[112].mxu0 %v3939_v61  ;;  %2575 = vmatmul.mubr.bf16.gmra.mrb[112].mxu1 %v3939_v61 }
 0x285   : > { %2163 = vmatprep.mubr.bf16.mxu0 %v3485_v42  ;;  %2584 = vmatprep.mubr.bf16.mxu1 %v3485_v42 }
 0x28c   : > { %2164 = vmatmul.mubr.bf16.gmra.mrb[116].mxu0 %v3937_v58  ;;  %2585 = vmatmul.mubr.bf16.gmra.mrb[116].mxu1 %v3937_v58 }
 0x28d   : > { %2173 = vmatprep.mubr.bf16.mxu0 %v3485_v42  ;;  %2594 = vmatprep.mubr.bf16.mxu1 %v3485_v42 }
 0x294   : > { %2174 = vmatmul.mubr.bf16.gmra.mrb[120].mxu0 %v3975_v36  ;;  %2595 = vmatmul.mubr.bf16.gmra.mrb[120].mxu1 %v3975_v36 }
 0x295   : > { %2183 = vmatprep.mubr.bf16.mxu0 %v3485_v42  ;;  %2604 = vmatprep.mubr.bf16.mxu1 %v3485_v42 }
 0x29c   : > { %2184 = vmatmul.mubr.bf16.gmra.mrb[124].mxu0 %v3973_v35  ;;  %2605 = vmatmul.mubr.bf16.gmra.mrb[124].mxu1 %v3973_v35  ;;  %v981_v35 = vadd.s32 8, %v4103_v4 }
 0x29d   : > { %2193 = vmatprep.mubr.bf16.mxu0 %v3485_v42  ;;  %2614 = vmatprep.mubr.bf16.mxu1 %v3485_v42 }
 0x29e   : > { %vm4119_vm2 = vcmp.lt.s32.totalorder %v981_v35, %v4107_v34 }
 0x2a4   : > { %2194 = vmatmul.mubr.bf16.gmra.mrb[128].mxu0 %v3987_v57  ;;  %2615 = vmatmul.mubr.bf16.gmra.mrb[128].mxu1 %v3987_v57  ;;  %v984_v57 = vadd.s32 32, %v4103_v4 }
 0x2a5   : > { %2203 = vmatprep.mubr.bf16.mxu0 %v3485_v42  ;;  %2624 = vmatprep.mubr.bf16.mxu1 %v3485_v42 }
 0x2a6   : > { %vm4174_vm5 = vcmp.lt.s32.totalorder %v984_v57, %v4107_v34 }
 0x2ac   : > { %2204 = vmatmul.mubr.bf16.gmra.mrb[132].mxu0 %v3985_v56  ;;  %2625 = vmatmul.mubr.bf16.gmra.mrb[132].mxu1 %v3985_v56 }
 0x2ad   : > { %2213 = vmatprep.mubr.bf16.mxu0 %v3485_v42  ;;  %2634 = vmatprep.mubr.bf16.mxu1 %v3485_v42 }
 0x2b4   : > { %2214 = vmatmul.mubr.bf16.gmra.mrb[136].mxu0 %v3999_v11  ;;  %2635 = vmatmul.mubr.bf16.gmra.mrb[136].mxu1 %v3999_v11 }
 0x2b5   : > { %2223 = vmatprep.mubr.bf16.mxu0 %v3485_v42  ;;  %2644 = vmatprep.mubr.bf16.mxu1 %v3485_v42 }
 0x2b7   : > { %v1209_v5 = vpop.f32.mrb[32].mxu0  ;;  %v1694_v33 = vpop.f32.mrb[32].mxu1 }
 0x2b8   : > { %v1211_v58 = vpop.f32.mrb[33].mxu0  ;;  %v1696_v61 = vpop.f32.mrb[33].mxu1  ;;  %v1432_v55 = vsel %vm4114_vm1, %v1209_v5, -inf  ;;  %v1853_v56 = vsel %vm4114_vm1, %v1694_v33, -inf  ;;  %v987_v5 = vadd.s32 56, %v4103_v4 }
 0x2b9   : > { %v1213_v36 = vpop.f32.mrb[34].mxu0  ;;  %v1698_v45 = vpop.f32.mrb[34].mxu1  ;;  %v1433_v60 = vsel %vm4114_vm1, %v1211_v58, -inf  ;;  %v1854_v62 = vsel %vm4114_vm1, %v1696_v61, -inf }
 0x2ba   : > { %v1215_v48 = vpop.f32.mrb[35].mxu0  ;;  %v1700_v49 = vpop.f32.mrb[35].mxu1  ;;  %v1434_v63 = vsel %vm4119_vm2, %v1213_v36, -inf  ;;  %v1855_v1 = vsel %vm4119_vm2, %v1698_v45, -inf  ;;  %vm4213_vm8 = vcmp.lt.s32.totalorder %v987_v5, %v4107_v34 }
 0x2bb   : > { %v1435_v3 = vsel %vm4119_vm2, %v1215_v48, -inf  ;;  %v1856_v6 = vsel %vm4119_vm2, %v1700_v49, -inf }
 0x2bc   : > { %2224 = vmatmul.mubr.bf16.gmra.mrb[140].mxu0 %v3997_v10  ;;  %2645 = vmatmul.mubr.bf16.gmra.mrb[140].mxu1 %v3997_v10 }
 0x2bd   : > { %2233 = vmatprep.mubr.bf16.mxu0 %v3485_v42  ;;  %2654 = vmatprep.mubr.bf16.mxu1 %v3485_v42 }
 0x2bf   : > { %v1219_v2 = vpop.f32.mrb[36].mxu0  ;;  %v1704_v0 = vpop.f32.mrb[36].mxu1 }
 0x2c0   : > { %v1436_v7 = vsel %vm4126_vm3, %v1219_v2, -inf  ;;  %v1857_v8 = vsel %vm4126_vm3, %v1704_v0, -inf  ;;  %v1221_v9 = vpop.f32.mrb[37].mxu0  ;;  %v1706_v10 = vpop.f32.mrb[37].mxu1 }
 0x2c1   : > { %v1496_v11 = vmax.f32 %v1432_v55, %v1436_v7  ;;  %v1917_v12 = vmax.f32 %v1853_v56, %v1857_v8  ;;  %v1437_v13 = vsel %vm4126_vm3, %v1221_v9, -inf  ;;  %v1858_v14 = vsel %vm4126_vm3, %v1706_v10, -inf  ;;  %v1223_v15 = vpop.f32.mrb[38].mxu0  ;;  %v1708_v16 = vpop.f32.mrb[38].mxu1 }
 0x2c2   : > { %v1527_v17 = vmax.f32 %v1433_v60, %v1437_v13  ;;  %v1948_v18 = vmax.f32 %v1854_v62, %v1858_v14  ;;  %v1438_v19 = vsel %vm4131_vm4, %v1223_v15, -inf  ;;  %v1859_v20 = vsel %vm4131_vm4, %v1708_v16, -inf  ;;  %v1225_v21 = vpop.f32.mrb[39].mxu0  ;;  %v1710_v22 = vpop.f32.mrb[39].mxu1 }
 0x2c3   : > { %v1497_v23 = vmax.f32 %v1434_v63, %v1438_v19  ;;  %v1918_v27 = vmax.f32 %v1855_v1, %v1859_v20  ;;  %v1439_v28 = vsel %vm4131_vm4, %v1225_v21, -inf  ;;  %v1860_v29 = vsel %vm4131_vm4, %v1710_v22, -inf }
 0x2c4   : > { %v1528_v30 = vmax.f32 %v1435_v3, %v1439_v28  ;;  %v1949_v31 = vmax.f32 %v1856_v6, %v1860_v29  ;;  %2234 = vmatmul.mubr.bf16.gmra.mrb[144].mxu0 %v4011_v26  ;;  %2655 = vmatmul.mubr.bf16.gmra.mrb[144].mxu1 %v4011_v26  ;;  %v988_v10 = vadd.s32 64, %v4103_v4 }
 0x2c5   : > { %2243 = vmatprep.mubr.bf16.mxu0 %v3485_v42  ;;  %2664 = vmatprep.mubr.bf16.mxu1 %v3485_v42 }
 0x2c6   : > { %vm4238_vm9 = vcmp.lt.s32.totalorder %v988_v10, %v4107_v34 }
 0x2c7   : > { %v1229_v24 = vpop.f32.mrb[40].mxu0  ;;  %v1714_v37 = vpop.f32.mrb[40].mxu1 }
 0x2c8   : > { %v1440_v39 = vsel %vm4174_vm5, %v1229_v24, -inf  ;;  %v1861_v26 = vsel %vm4174_vm5, %v1714_v37, -inf  ;;  %v1231_v40 = vpop.f32.mrb[41].mxu0  ;;  %v1716_v41 = vpop.f32.mrb[41].mxu1 }
 0x2c9   : > { %v1498_v33 = vmax.f32 %v1496_v11, %v1440_v39  ;;  %v1919_v58 = vmax.f32 %v1917_v12, %v1861_v26  ;;  %v1441_v61 = vsel %vm4174_vm5, %v1231_v40, -inf  ;;  %v1862_v35 = vsel %vm4174_vm5, %v1716_v41, -inf  ;;  %v1233_v36 = vpop.f32.mrb[42].mxu0  ;;  %v1718_v45 = vpop.f32.mrb[42].mxu1 }
 0x2ca   : > { %v1529_v46 = vmax.f32 %v1527_v17, %v1441_v61  ;;  %v1950_v47 = vmax.f32 %v1948_v18, %v1862_v35  ;;  %v1442_v48 = vsel %vm4181_vm6, %v1233_v36, -inf  ;;  %v1863_v49 = vsel %vm4181_vm6, %v1718_v45, -inf  ;;  %v1235_v55 = vpop.f32.mrb[43].mxu0  ;;  %v1720_v56 = vpop.f32.mrb[43].mxu1 }
 0x2cb   : > { %v1499_v57 = vmax.f32 %v1497_v23, %v1442_v48  ;;  %v1920_v59 = vmax.f32 %v1918_v27, %v1863_v49  ;;  %v1443_v60 = vsel %vm4181_vm6, %v1235_v55, -inf  ;;  %v1864_v62 = vsel %vm4181_vm6, %v1720_v56, -inf }
 0x2cc   : > { %v1530_v63 = vmax.f32 %v1528_v30, %v1443_v60  ;;  %v1951_v1 = vmax.f32 %v1949_v31, %v1864_v62  ;;  %2244 = vmatmul.mubr.bf16.gmra.mrb[148].mxu0 %v4009_v25  ;;  %2665 = vmatmul.mubr.bf16.gmra.mrb[148].mxu1 %v4009_v25  ;;  %v989_v11 = vadd.s32 72, %v4103_v4 }
 0x2cd   : > { %2253 = vmatprep.mubr.bf16.mxu0 %v3485_v42  ;;  %2674 = vmatprep.mubr.bf16.mxu1 %v3485_v42 }
 0x2ce   : > { %vm4245_vm10 = vcmp.lt.s32.totalorder %v989_v11, %v4107_v34 }
 0x2cf   : > { %v1239_v0 = vpop.f32.mrb[44].mxu0  ;;  %v1724_v3 = vpop.f32.mrb[44].mxu1 }
 0x2d0   : > { %v1444_v7 = vsel %vm4206_vm7, %v1239_v0, -inf  ;;  %v1865_v25 = vsel %vm4206_vm7, %v1724_v3, -inf  ;;  %v1241_v8 = vpop.f32.mrb[45].mxu0  ;;  %v1726_v9 = vpop.f32.mrb[45].mxu1 }
 0x2d1   : > { %v1500_v12 = vmax.f32 %v1498_v33, %v1444_v7  ;;  %v1921_v13 = vmax.f32 %v1919_v58, %v1865_v25  ;;  %v1445_v14 = vsel %vm4206_vm7, %v1241_v8, -inf  ;;  %v1866_v15 = vsel %vm4206_vm7, %v1726_v9, -inf  ;;  %v1243_v16 = vpop.f32.mrb[46].mxu0  ;;  %v1728_v17 = vpop.f32.mrb[46].mxu1 }
 0x2d2   : > { %v1531_v18 = vmax.f32 %v1529_v46, %v1445_v14  ;;  %v1952_v19 = vmax.f32 %v1950_v47, %v1866_v15  ;;  %v1446_v20 = vsel %vm4213_vm8, %v1243_v16, -inf  ;;  %v1867_v21 = vsel %vm4213_vm8, %v1728_v17, -inf  ;;  %v1245_v22 = vpop.f32.mrb[47].mxu0  ;;  %v1730_v23 = vpop.f32.mrb[47].mxu1 }
 0x2d3   : > { %v1501_v27 = vmax.f32 %v1499_v57, %v1446_v20  ;;  %v1922_v28 = vmax.f32 %v1920_v59, %v1867_v21  ;;  %v1447_v29 = vsel %vm4213_vm8, %v1245_v22, -inf  ;;  %v1868_v30 = vsel %vm4213_vm8, %v1730_v23, -inf }
 0x2d4   : > { %v1532_v31 = vmax.f32 %v1530_v63, %v1447_v29  ;;  %v1953_v24 = vmax.f32 %v1951_v1, %v1868_v30  ;;  %2254 = vmatmul.mubr.bf16.gmra.mrb[152].mxu0 %v4023_v44  ;;  %2675 = vmatmul.mubr.bf16.gmra.mrb[152].mxu1 %v4023_v44  ;;  %v990_v33 = vadd.s32 80, %v4103_v4  ;;  %v991_v58 = vadd.s32 88, %v4103_v4 }
 0x2d5   : > { %2263 = vmatprep.mubr.bf16.mxu0 %v3485_v42  ;;  %2684 = vmatprep.mubr.bf16.mxu1 %v3485_v42 }
 0x2d6   : > { %vm4270_vm11 = vcmp.lt.s32.totalorder %v990_v33, %v4107_v34  ;;  %vm4275_vm12 = vcmp.lt.s32.totalorder %v991_v58, %v4107_v34 }
 0x2d7   : > { %v1249_v39 = vpop.f32.mrb[48].mxu0  ;;  %v1734_v26 = vpop.f32.mrb[48].mxu1 }
 0x2d8   : > { %v1448_v41 = vsel %vm4238_vm9, %v1249_v39, -inf  ;;  %v1869_v44 = vsel %vm4238_vm9, %v1734_v26, -inf  ;;  %v1251_v51 = vpop.f32.mrb[49].mxu0  ;;  %v1736_v5 = vpop.f32.mrb[49].mxu1 }
 0x2d9   : > { %v1502_v42 = vmax.f32 %v1500_v12, %v1448_v41  ;;  %v1923_v61 = vmax.f32 %v1921_v13, %v1869_v44  ;;  %v1449_v35 = vsel %vm4238_vm9, %v1251_v51, -inf  ;;  %v1870_v36 = vsel %vm4238_vm9, %v1736_v5, -inf  ;;  %v1253_v45 = vpop.f32.mrb[50].mxu0  ;;  %v1738_v46 = vpop.f32.mrb[50].mxu1 }
 0x2da   : > { %v1533_v47 = vmax.f32 %v1531_v18, %v1449_v35  ;;  %v1954_v48 = vmax.f32 %v1952_v19, %v1870_v36  ;;  %v1450_v49 = vsel %vm4245_vm10, %v1253_v45, -inf  ;;  %v1871_v55 = vsel %vm4245_vm10, %v1738_v46, -inf  ;;  %v1255_v56 = vpop.f32.mrb[51].mxu0  ;;  %v1740_v57 = vpop.f32.mrb[51].mxu1 }
 0x2db   : > { %v1503_v59 = vmax.f32 %v1501_v27, %v1450_v49  ;;  %v1924_v60 = vmax.f32 %v1922_v28, %v1871_v55  ;;  %v1451_v62 = vsel %vm4245_vm10, %v1255_v56, -inf  ;;  %v1872_v63 = vsel %vm4245_vm10, %v1740_v57, -inf }
 0x2dc   : > { %v1534_v1 = vmax.f32 %v1532_v31, %v1451_v62  ;;  %v1955_v0 = vmax.f32 %v1953_v24, %v1872_v63  ;;  %2264 = vmatmul.mubr.bf16.gmra.mrb[156].mxu0 %v4021_v43  ;;  %2685 = vmatmul.mubr.bf16.gmra.mrb[156].mxu1 %v4021_v43  ;;  %v992_v12 = vadd.s32 96, %v4103_v4  ;;  %v993_v13 = vadd.s32 104, %v4103_v4 }
 0x2dd   : > { %v5008_v5 = vmov 0  ;;  %v994_v35 = vadd.s32 112, %v4103_v4  ;;  %v995_v36 = vadd.s32 120, %v4103_v4 }
 0x2de   : > { %vm4298_vm13 = vcmp.lt.s32.totalorder %v992_v12, %v4107_v34  ;;  %vm4303_vm14 = vcmp.lt.s32.totalorder %v993_v13, %v4107_v34  ;;  %v5012_v13 = vmov 0 }
 0x2df   : > { %v1259_v7 = vpop.f32.mrb[52].mxu0  ;;  %v1744_v25 = vpop.f32.mrb[52].mxu1  ;;  %v5009_v5 = vsel %vm4303_vm14, 4294967295, %v5008_v5  ;;  %vm4326_vm15 = vcmp.lt.s32.totalorder %v994_v35, %v4107_v34  ;;  %vm4331_vm0 = vcmp.lt.s32.totalorder %v995_v36, %v4107_v34  ;;  %v5014_v35 = vmov 0 }
 0x2e0   : > { %v1452_v9 = vsel %vm4270_vm11, %v1259_v7, -inf  ;;  %v1873_v10 = vsel %vm4270_vm11, %v1744_v25, -inf  ;;  %v1261_v11 = vpop.f32.mrb[53].mxu0  ;;  %v1746_v43 = vpop.f32.mrb[53].mxu1  ;;  %v5013_v13 = vsel %vm4331_vm0, 4294967295, %v5012_v13 }
 0x2e1   : > { %v1504_v14 = vmax.f32 %v1502_v42, %v1452_v9  ;;  %v1925_v15 = vmax.f32 %v1923_v61, %v1873_v10  ;;  %v1453_v16 = vsel %vm4270_vm11, %v1261_v11, -inf  ;;  %v1874_v17 = vsel %vm4270_vm11, %v1746_v43, -inf  ;;  %v1263_v18 = vpop.f32.mrb[54].mxu0  ;;  %v1748_v19 = vpop.f32.mrb[54].mxu1 }
 0x2e2   : > { %v1535_v20 = vmax.f32 %v1533_v47, %v1453_v16  ;;  %v1956_v21 = vmax.f32 %v1954_v48, %v1874_v17  ;;  %v1454_v22 = vsel %vm4275_vm12, %v1263_v18, -inf  ;;  %v1875_v23 = vsel %vm4275_vm12, %v1748_v19, -inf  ;;  %v1265_v27 = vpop.f32.mrb[55].mxu0  ;;  %v1750_v28 = vpop.f32.mrb[55].mxu1 }
 0x2e3   : > { %v1505_v29 = vmax.f32 %v1503_v59, %v1454_v22  ;;  %v1926_v30 = vmax.f32 %v1924_v60, %v1875_v23  ;;  %v1455_v31 = vsel %vm4275_vm12, %v1265_v27, -inf  ;;  %v1876_v24 = vsel %vm4275_vm12, %v1750_v28, -inf }
 0x2e4   : > { %v1536_v39 = vmax.f32 %v1534_v1, %v1455_v31  ;;  %v1957_v26 = vmax.f32 %v1955_v0, %v1876_v24  ;;  %v5010_v11 = vmov 0  ;;  %v996_v18 = vadd.s32 128, %v4103_v4 }
 0x2e5   : > { %v5011_v11 = vsel %vm4326_vm15, 4294967295, %v5010_v11  ;;  %v997_v19 = vadd.s32 136, %v4103_v4 }
 0x2e7   : > { %v1269_v44 = vpop.f32.mrb[56].mxu0  ;;  %v1754_v51 = vpop.f32.mrb[56].mxu1 }
 0x2e8   : > { %v1456_v33 = vsel %vm4298_vm13, %v1269_v44, -inf  ;;  %v1877_v58 = vsel %vm4298_vm13, %v1754_v51, -inf  ;;  %v1271_v42 = vpop.f32.mrb[57].mxu0  ;;  %v1756_v61 = vpop.f32.mrb[57].mxu1 }
 0x2e9   : > { %v1506_v45 = vmax.f32 %v1504_v14, %v1456_v33  ;;  %v1927_v46 = vmax.f32 %v1925_v15, %v1877_v58  ;;  %v1457_v47 = vsel %vm4298_vm13, %v1271_v42, -inf  ;;  %v1878_v48 = vsel %vm4298_vm13, %v1756_v61, -inf  ;;  %v1273_v49 = vpop.f32.mrb[58].mxu0  ;;  %v1758_v55 = vpop.f32.mrb[58].mxu1 }
 0x2ea   : > { %v1537_v56 = vmax.f32 %v1535_v20, %v1457_v47  ;;  %v1958_v57 = vmax.f32 %v1956_v21, %v1878_v48  ;;  %v1458_v59 = vsel %vm4303_vm14, %v1273_v49, -inf  ;;  %v1879_v60 = vsel %vm4303_vm14, %v1758_v55, -inf  ;;  %v1275_v62 = vpop.f32.mrb[59].mxu0  ;;  %v1760_v63 = vpop.f32.mrb[59].mxu1 }
 0x2eb   : > { %v1507_v1 = vmax.f32 %v1505_v29, %v1458_v59  ;;  %v1928_v0 = vmax.f32 %v1926_v30, %v1879_v60  ;;  %v1459_v7 = vsel %vm4303_vm14, %v1275_v62, -inf  ;;  %v1880_v25 = vsel %vm4303_vm14, %v1760_v63, -inf }
 0x2ec   : > { %v1538_v9 = vmax.f32 %v1536_v39, %v1459_v7  ;;  %v1959_v10 = vmax.f32 %v1957_v26, %v1880_v25  ;;  %vm4359_vm14 = vcmp.lt.s32.totalorder %v997_v19, %v4107_v34 }
 0x2ef   : > { %v1279_v43 = vpop.f32.mrb[60].mxu0  ;;  %v1764_v12 = vpop.f32.mrb[60].mxu1 }
 0x2f0   : > { %v1460_v14 = vsel %vm4326_vm15, %v1279_v43, -inf  ;;  %v1881_v15 = vsel %vm4326_vm15, %v1764_v12, -inf  ;;  %v1281_v16 = vpop.f32.mrb[61].mxu0  ;;  %v1766_v17 = vpop.f32.mrb[61].mxu1 }
 0x2f1   : > { %v1508_v20 = vmax.f32 %v1506_v45, %v1460_v14  ;;  %v1929_v21 = vmax.f32 %v1927_v46, %v1881_v15  ;;  %v1461_v22 = vsel %vm4326_vm15, %v1281_v16, -inf  ;;  %v1882_v23 = vsel %vm4326_vm15, %v1766_v17, -inf  ;;  %v1283_v27 = vpop.f32.mrb[62].mxu0  ;;  %v1768_v28 = vpop.f32.mrb[62].mxu1 }
 0x2f2   : > { %v1539_v29 = vmax.f32 %v1537_v56, %v1461_v22  ;;  %v1960_v30 = vmax.f32 %v1958_v57, %v1882_v23  ;;  %v1462_v31 = vsel %vm4331_vm0, %v1283_v27, -inf  ;;  %v1883_v24 = vsel %vm4331_vm0, %v1768_v28, -inf  ;;  %v1285_v39 = vpop.f32.mrb[63].mxu0  ;;  %v1770_v26 = vpop.f32.mrb[63].mxu1 }
 0x2f3   : > { %v1509_v44 = vmax.f32 %v1507_v1, %v1462_v31  ;;  %v1930_v51 = vmax.f32 %v1928_v0, %v1883_v24  ;;  %v1463_v33 = vsel %vm4331_vm0, %v1285_v39, -inf  ;;  %v1884_v58 = vsel %vm4331_vm0, %v1770_v26, -inf }
 0x2f4   : > { %v1540_v42 = vmax.f32 %v1538_v9, %v1463_v33  ;;  %v1961_v61 = vmax.f32 %v1959_v10, %v1884_v58  ;;  %vm4354_vm15 = vcmp.lt.s32.totalorder %v996_v18, %v4107_v34  ;;  %v5016_v46 = vmov 0 }
 0x2f5   : > { %v5015_v35 = vsel %vm4354_vm15, 4294967295, %v5014_v35  ;;  %v5017_v46 = vsel %vm4359_vm14, 4294967295, %v5016_v46  ;;  %v998_v56 = vadd.s32 144, %v4103_v4  ;;  %v999_v57 = vadd.s32 152, %v4103_v4 }
 0x2f6   : > { %v5020_v23 = vmov 0  ;;  %v1000_v31 = vadd.s32 160, %v4103_v4  ;;  %v1001_v24 = vadd.s32 168, %v4103_v4 }
 0x2f7   : > { %v1289_v36 = vpop.f32.mrb[64].mxu0  ;;  %v1774_v45 = vpop.f32.mrb[64].mxu1  ;;  %vm4387_vm0 = vcmp.lt.s32.totalorder %v999_v57, %v4107_v34 }
 0x2f8   : > { %v1464_v47 = vsel %vm4354_vm15, %v1289_v36, -inf  ;;  %v1885_v48 = vsel %vm4354_vm15, %v1774_v45, -inf  ;;  %v1291_v49 = vpop.f32.mrb[65].mxu0  ;;  %v1776_v55 = vpop.f32.mrb[65].mxu1  ;;  %v5021_v23 = vsel %vm4387_vm0, 4294967295, %v5020_v23 }
 0x2f9   : > { %v1510_v59 = vmax.f32 %v1508_v20, %v1464_v47  ;;  %v1931_v60 = vmax.f32 %v1929_v21, %v1885_v48  ;;  %v1465_v62 = vsel %vm4354_vm15, %v1291_v49, -inf  ;;  %v1886_v63 = vsel %vm4354_vm15, %v1776_v55, -inf  ;;  %v1293_v1 = vpop.f32.mrb[66].mxu0  ;;  %v1778_v0 = vpop.f32.mrb[66].mxu1 }
 0x2fa   : > { %v1541_v7 = vmax.f32 %v1539_v29, %v1465_v62  ;;  %v1962_v25 = vmax.f32 %v1960_v30, %v1886_v63  ;;  %v1466_v9 = vsel %vm4359_vm14, %v1293_v1, -inf  ;;  %v1887_v10 = vsel %vm4359_vm14, %v1778_v0, -inf  ;;  %v1295_v43 = vpop.f32.mrb[67].mxu0  ;;  %v1780_v12 = vpop.f32.mrb[67].mxu1 }
 0x2fb   : > { %v1511_v14 = vmax.f32 %v1509_v44, %v1466_v9  ;;  %v1932_v15 = vmax.f32 %v1930_v51, %v1887_v10  ;;  %v1467_v16 = vsel %vm4359_vm14, %v1295_v43, -inf  ;;  %v1888_v17 = vsel %vm4359_vm14, %v1780_v12, -inf }
 0x2fc   : > { %v1542_v18 = vmax.f32 %v1540_v42, %v1467_v16  ;;  %v1963_v19 = vmax.f32 %v1961_v61, %v1888_v17  ;;  %vm4382_vm15 = vcmp.lt.s32.totalorder %v998_v56, %v4107_v34  ;;  %v5018_v20 = vmov 0 }
 0x2fd   : > { %v5019_v20 = vsel %vm4382_vm15, 4294967295, %v5018_v20  ;;  %v5022_v62 = vmov 0  ;;  %vm4415_vm14 = vcmp.lt.s32.totalorder %v1001_v24, %v4107_v34  ;;  %v5024_v0 = vmov 0 }
 0x2fe   : > { %v5025_v0 = vsel %vm4415_vm14, 4294967295, %v5024_v0  ;;  %v1002_v43 = vadd.s32 176, %v4103_v4  ;;  %v1003_v12 = vadd.s32 184, %v4103_v4 }
 0x2ff   : > { %v1299_v21 = vpop.f32.mrb[68].mxu0  ;;  %v1784_v22 = vpop.f32.mrb[68].mxu1 }
 0x300   : > { %v1468_v27 = vsel %vm4382_vm15, %v1299_v21, -inf  ;;  %v1889_v28 = vsel %vm4382_vm15, %v1784_v22, -inf  ;;  %v1301_v29 = vpop.f32.mrb[69].mxu0  ;;  %v1786_v30 = vpop.f32.mrb[69].mxu1 }
 0x301   : > { %v1512_v39 = vmax.f32 %v1510_v59, %v1468_v27  ;;  %v1933_v26 = vmax.f32 %v1931_v60, %v1889_v28  ;;  %v1469_v44 = vsel %vm4382_vm15, %v1301_v29, -inf  ;;  %v1890_v51 = vsel %vm4382_vm15, %v1786_v30, -inf  ;;  %v1303_v33 = vpop.f32.mrb[70].mxu0  ;;  %v1788_v58 = vpop.f32.mrb[70].mxu1 }
 0x302   : > { %v1543_v42 = vmax.f32 %v1541_v7, %v1469_v44  ;;  %v1964_v61 = vmax.f32 %v1962_v25, %v1890_v51  ;;  %v1470_v36 = vsel %vm4387_vm0, %v1303_v33, -inf  ;;  %v1891_v45 = vsel %vm4387_vm0, %v1788_v58, -inf  ;;  %v1305_v47 = vpop.f32.mrb[71].mxu0  ;;  %v1790_v48 = vpop.f32.mrb[71].mxu1 }
 0x303   : > { %v1513_v49 = vmax.f32 %v1511_v14, %v1470_v36  ;;  %v1934_v55 = vmax.f32 %v1932_v15, %v1891_v45  ;;  %v1471_v56 = vsel %vm4387_vm0, %v1305_v47, -inf  ;;  %v1892_v57 = vsel %vm4387_vm0, %v1790_v48, -inf }
 0x304   : > { %v1544_v59 = vmax.f32 %v1542_v18, %v1471_v56  ;;  %v1965_v60 = vmax.f32 %v1963_v19, %v1892_v57  ;;  %vm4410_vm15 = vcmp.lt.s32.totalorder %v1000_v31, %v4107_v34  ;;  %v5026_v33 = vmov 0 }
 0x305   : > { %v5023_v62 = vsel %vm4410_vm15, 4294967295, %v5022_v62  ;;  %vm4443_vm0 = vcmp.lt.s32.totalorder %v1003_v12, %v4107_v34 }
 0x307   : > { %v1309_v63 = vpop.f32.mrb[72].mxu0  ;;  %v1794_v1 = vpop.f32.mrb[72].mxu1 }
 0x308   : > { %v1472_v7 = vsel %vm4410_vm15, %v1309_v63, -inf  ;;  %v1893_v25 = vsel %vm4410_vm15, %v1794_v1, -inf  ;;  %v1311_v9 = vpop.f32.mrb[73].mxu0  ;;  %v1796_v10 = vpop.f32.mrb[73].mxu1 }
 0x309   : > { %v1514_v14 = vmax.f32 %v1512_v39, %v1472_v7  ;;  %v1935_v15 = vmax.f32 %v1933_v26, %v1893_v25  ;;  %v1473_v16 = vsel %vm4410_vm15, %v1311_v9, -inf  ;;  %v1894_v17 = vsel %vm4410_vm15, %v1796_v10, -inf  ;;  %v1313_v18 = vpop.f32.mrb[74].mxu0  ;;  %v1798_v19 = vpop.f32.mrb[74].mxu1 }
 0x30a   : > { %v1545_v21 = vmax.f32 %v1543_v42, %v1473_v16  ;;  %v1966_v22 = vmax.f32 %v1964_v61, %v1894_v17  ;;  %v1474_v27 = vsel %vm4415_vm14, %v1313_v18, -inf  ;;  %v1895_v28 = vsel %vm4415_vm14, %v1798_v19, -inf  ;;  %v1315_v29 = vpop.f32.mrb[75].mxu0  ;;  %v1800_v30 = vpop.f32.mrb[75].mxu1 }
 0x30b   : > { %v1515_v31 = vmax.f32 %v1513_v49, %v1474_v27  ;;  %v1936_v24 = vmax.f32 %v1934_v55, %v1895_v28  ;;  %v1475_v39 = vsel %vm4415_vm14, %v1315_v29, -inf  ;;  %v1896_v26 = vsel %vm4415_vm14, %v1800_v30, -inf }
 0x30c   : > { %v1546_v44 = vmax.f32 %v1544_v59, %v1475_v39  ;;  %v1967_v51 = vmax.f32 %v1965_v60, %v1896_v26  ;;  %vm4438_vm15 = vcmp.lt.s32.totalorder %v1002_v43, %v4107_v34  ;;  %v5028_v61 = vmov 0 }
 0x30d   : > { %v5027_v33 = vsel %vm4438_vm15, 4294967295, %v5026_v33  ;;  %v5029_v61 = vsel %vm4443_vm0, 4294967295, %v5028_v61  ;;  %v1004_v49 = vadd.s32 192, %v4103_v4  ;;  %v1005_v55 = vadd.s32 200, %v4103_v4 }
 0x30e   : > { %5030 = vst [vmem:[#allocation8_spill] sm:$0xff] %v5029_v61  ;;  %v5034_v28 = vmov 0  ;;  %v1006_v39 = vadd.s32 208, %v4103_v4  ;;  %v1007_v26 = vadd.s32 216, %v4103_v4 }
 0x30f   : > { %v1319_v58 = vpop.f32.mrb[76].mxu0  ;;  %v1804_v42 = vpop.f32.mrb[76].mxu1  ;;  %vm4471_vm14 = vcmp.lt.s32.totalorder %v1005_v55, %v4107_v34 }
 0x310   : > { %v1476_v36 = vsel %vm4438_vm15, %v1319_v58, -inf  ;;  %v1897_v45 = vsel %vm4438_vm15, %v1804_v42, -inf  ;;  %v1321_v47 = vpop.f32.mrb[77].mxu0  ;;  %v1806_v48 = vpop.f32.mrb[77].mxu1  ;;  %v5035_v28 = vsel %vm4471_vm14, 4294967295, %v5034_v28 }
 0x311   : > { %v1516_v56 = vmax.f32 %v1514_v14, %v1476_v36  ;;  %v1937_v57 = vmax.f32 %v1935_v15, %v1897_v45  ;;  %v1477_v59 = vsel %vm4438_vm15, %v1321_v47, -inf  ;;  %v1898_v60 = vsel %vm4438_vm15, %v1806_v48, -inf  ;;  %v1323_v63 = vpop.f32.mrb[78].mxu0  ;;  %v1808_v1 = vpop.f32.mrb[78].mxu1  ;;  %5036 = vst [vmem:[#allocation10_spill] sm:$0xff] %v5035_v28 }
 0x312   : > { %v1547_v7 = vmax.f32 %v1545_v21, %v1477_v59  ;;  %v1968_v25 = vmax.f32 %v1966_v22, %v1898_v60  ;;  %v1478_v9 = vsel %vm4443_vm0, %v1323_v63, -inf  ;;  %v1899_v10 = vsel %vm4443_vm0, %v1808_v1, -inf  ;;  %v1325_v43 = vpop.f32.mrb[79].mxu0  ;;  %v1810_v12 = vpop.f32.mrb[79].mxu1 }
 0x313   : > { %v1517_v14 = vmax.f32 %v1515_v31, %v1478_v9  ;;  %v1938_v15 = vmax.f32 %v1936_v24, %v1899_v10  ;;  %v1479_v16 = vsel %vm4443_vm0, %v1325_v43, -inf  ;;  %v1900_v17 = vsel %vm4443_vm0, %v1810_v12, -inf }
 0x314   : > { %v1548_v18 = vmax.f32 %v1546_v44, %v1479_v16  ;;  %v1969_v19 = vmax.f32 %v1967_v51, %v1900_v17  ;;  %vm4466_vm15 = vcmp.lt.s32.totalorder %v1004_v49, %v4107_v34  ;;  %v5031_v21 = vmov 0 }
 0x315   : > { %v5032_v21 = vsel %vm4466_vm15, 4294967295, %v5031_v21  ;;  %vm4499_vm0 = vcmp.lt.s32.totalorder %v1007_v26, %v4107_v34  ;;  %v5040_v12 = vmov 0 }
 0x316   : > { %5033 = vst [vmem:[#allocation9_spill] sm:$0xff] %v5032_v21  ;;  %v5041_v12 = vsel %vm4499_vm0, 4294967295, %v5040_v12 }
 0x317   : > { %v1329_v22 = vpop.f32.mrb[80].mxu0  ;;  %v1814_v27 = vpop.f32.mrb[80].mxu1  ;;  %5042 = vst [vmem:[#allocation12_spill] sm:$0xff] %v5041_v12 }
 0x318   : > { %v1480_v29 = vsel %vm4466_vm15, %v1329_v22, -inf  ;;  %v1901_v30 = vsel %vm4466_vm15, %v1814_v27, -inf  ;;  %v1331_v31 = vpop.f32.mrb[81].mxu0  ;;  %v1816_v24 = vpop.f32.mrb[81].mxu1 }
 0x319   : > { %v1518_v44 = vmax.f32 %v1516_v56, %v1480_v29  ;;  %v1939_v51 = vmax.f32 %v1937_v57, %v1901_v30  ;;  %v1481_v58 = vsel %vm4466_vm15, %v1331_v31, -inf  ;;  %v1902_v42 = vsel %vm4466_vm15, %v1816_v24, -inf  ;;  %v1333_v36 = vpop.f32.mrb[82].mxu0  ;;  %v1818_v45 = vpop.f32.mrb[82].mxu1 }
 0x31a   : > { %v1549_v47 = vmax.f32 %v1547_v7, %v1481_v58  ;;  %v1970_v48 = vmax.f32 %v1968_v25, %v1902_v42  ;;  %v1482_v49 = vsel %vm4471_vm14, %v1333_v36, -inf  ;;  %v1903_v55 = vsel %vm4471_vm14, %v1818_v45, -inf  ;;  %v1335_v59 = vpop.f32.mrb[83].mxu0  ;;  %v1820_v60 = vpop.f32.mrb[83].mxu1 }
 0x31b   : > { %v1519_v56 = vmax.f32 %v1517_v14, %v1482_v49  ;;  %v1940_v57 = vmax.f32 %v1938_v15, %v1903_v55  ;;  %v1483_v63 = vsel %vm4471_vm14, %v1335_v59, -inf  ;;  %v1904_v1 = vsel %vm4471_vm14, %v1820_v60, -inf }
 0x31c   : > { %v1550_v9 = vmax.f32 %v1548_v18, %v1483_v63  ;;  %v1971_v10 = vmax.f32 %v1969_v19, %v1904_v1  ;;  %vm4494_vm15 = vcmp.lt.s32.totalorder %v1006_v39, %v4107_v34  ;;  %v5037_v7 = vmov 0 }
 0x31d   : > { %v5038_v7 = vsel %vm4494_vm15, 4294967295, %v5037_v7  ;;  %v1008_v18 = vadd.s32 224, %v4103_v4  ;;  %v1009_v19 = vadd.s32 232, %v4103_v4  ;;  %v5046_v1 = vmov 0 }
 0x31e   : > { %5039 = vst [vmem:[#allocation11_spill] sm:$0xff] %v5038_v7 }
 0x31f   : > { %v1339_v25 = vpop.f32.mrb[84].mxu0  ;;  %v1824_v43 = vpop.f32.mrb[84].mxu1  ;;  %vm4527_vm14 = vcmp.lt.s32.totalorder %v1009_v19, %v4107_v34 }
 0x320   : > { %v1484_v14 = vsel %vm4494_vm15, %v1339_v25, -inf  ;;  %v1905_v15 = vsel %vm4494_vm15, %v1824_v43, -inf  ;;  %v1341_v16 = vpop.f32.mrb[85].mxu0  ;;  %v1826_v17 = vpop.f32.mrb[85].mxu1  ;;  %v5047_v1 = vsel %vm4527_vm14, 4294967295, %v5046_v1  ;;  %v1010_v25 = vadd.s32 240, %v4103_v4 }
 0x321   : > { %v1520_v22 = vmax.f32 %v1518_v44, %v1484_v14  ;;  %v1941_v27 = vmax.f32 %v1939_v51, %v1905_v15  ;;  %v1485_v29 = vsel %vm4494_vm15, %v1341_v16, -inf  ;;  %v1906_v30 = vsel %vm4494_vm15, %v1826_v17, -inf  ;;  %v1343_v31 = vpop.f32.mrb[86].mxu0  ;;  %v1828_v24 = vpop.f32.mrb[86].mxu1  ;;  %5048 = vst [vmem:[#allocation14_spill] sm:$0xff] %v5047_v1 }
 0x322   : > { %v1551_v39 = vmax.f32 %v1549_v47, %v1485_v29  ;;  %v1972_v26 = vmax.f32 %v1970_v48, %v1906_v30  ;;  %v1486_v58 = vsel %vm4499_vm0, %v1343_v31, -inf  ;;  %v1907_v42 = vsel %vm4499_vm0, %v1828_v24, -inf  ;;  %v1345_v36 = vpop.f32.mrb[87].mxu0  ;;  %v1830_v45 = vpop.f32.mrb[87].mxu1 }
 0x323   : > { %v1521_v44 = vmax.f32 %v1519_v56, %v1486_v58  ;;  %v1942_v51 = vmax.f32 %v1940_v57, %v1907_v42  ;;  %v1487_v49 = vsel %vm4499_vm0, %v1345_v36, -inf  ;;  %v1908_v55 = vsel %vm4499_vm0, %v1830_v45, -inf }
 0x324   : > { %v1552_v59 = vmax.f32 %v1550_v9, %v1487_v49  ;;  %v1973_v60 = vmax.f32 %v1971_v10, %v1908_v55  ;;  %vm4522_vm15 = vcmp.lt.s32.totalorder %v1008_v18, %v4107_v34  ;;  %v5043_v47 = vmov 0 }
 0x325   : > { %v5044_v47 = vsel %vm4522_vm15, 4294967295, %v5043_v47  ;;  %v1011_v43 = vadd.s32 248, %v4103_v4 }
 0x326   : > { %5045 = vst [vmem:[#allocation13_spill] sm:$0xff] %v5044_v47 }
 0x327   : > { %v1349_v48 = vpop.f32.mrb[88].mxu0  ;;  %v1834_v63 = vpop.f32.mrb[88].mxu1  ;;  %vm4555_vm0 = vcmp.lt.s32.totalorder %v1011_v43, %v4107_v34 }
 0x328   : > { %v1488_v56 = vsel %vm4522_vm15, %v1349_v48, -inf  ;;  %v1909_v57 = vsel %vm4522_vm15, %v1834_v63, -inf  ;;  %v1351_v9 = vpop.f32.mrb[89].mxu0  ;;  %v1836_v10 = vpop.f32.mrb[89].mxu1  ;;  %v5052_v63 = vmov 0 }
 0x329   : > { %v1522_v14 = vmax.f32 %v1520_v22, %v1488_v56  ;;  %v1943_v15 = vmax.f32 %v1941_v27, %v1909_v57  ;;  %v1489_v16 = vsel %vm4522_vm15, %v1351_v9, -inf  ;;  %v1910_v17 = vsel %vm4522_vm15, %v1836_v10, -inf  ;;  %v1353_v18 = vpop.f32.mrb[90].mxu0  ;;  %v1838_v19 = vpop.f32.mrb[90].mxu1 }
 0x32a   : > { %v1553_v29 = vmax.f32 %v1551_v39, %v1489_v16  ;;  %v1974_v30 = vmax.f32 %v1972_v26, %v1910_v17  ;;  %v1490_v31 = vsel %vm4527_vm14, %v1353_v18, -inf  ;;  %v1911_v24 = vsel %vm4527_vm14, %v1838_v19, -inf  ;;  %v1355_v58 = vpop.f32.mrb[91].mxu0  ;;  %v1840_v42 = vpop.f32.mrb[91].mxu1 }
 0x32b   : > { %v1523_v22 = vmax.f32 %v1521_v44, %v1490_v31  ;;  %v1944_v27 = vmax.f32 %v1942_v51, %v1911_v24  ;;  %v1491_v36 = vsel %vm4527_vm14, %v1355_v58, -inf  ;;  %v1912_v45 = vsel %vm4527_vm14, %v1840_v42, -inf }
 0x32c   : > { %v1554_v49 = vmax.f32 %v1552_v59, %v1491_v36  ;;  %v1975_v55 = vmax.f32 %v1973_v60, %v1912_v45  ;;  %vm4550_vm15 = vcmp.lt.s32.totalorder %v1010_v25, %v4107_v34  ;;  %v5049_v39 = vmov 0 }
 0x32d   : > { %v5050_v39 = vsel %vm4550_vm15, 4294967295, %v5049_v39  ;;  %v5053_v63 = vsel %vm4555_vm0, 4294967295, %v5052_v63  ;;  %v2890_v45 = vsub.s32 0, %v4103_v4 }
 0x32e   : > { %5051 = vst [vmem:[#allocation15_spill] sm:$0xff] %v5050_v39  ;;  %5054 = vst [vmem:[#allocation16_spill] sm:$0xff] %v5053_v63 }
 0x32f   : > { %v1359_v26 = vpop.f32.mrb[92].mxu0  ;;  %v1844_v48 = vpop.f32.mrb[92].mxu1 }
 0x330   : > { %v1492_v44 = vsel %vm4550_vm15, %v1359_v26, -inf  ;;  %v1913_v51 = vsel %vm4550_vm15, %v1844_v48, -inf  ;;  %v1361_v59 = vpop.f32.mrb[93].mxu0  ;;  %v1846_v60 = vpop.f32.mrb[93].mxu1  ;;  %v2898_v26 = vsub.s32 2, %v4103_v4 }
 0x331   : > { %v1524_v56 = vmax.f32 %v1522_v14, %v1492_v44  ;;  %v1945_v57 = vmax.f32 %v1943_v15, %v1913_v51  ;;  %v1493_v9 = vsel %vm4550_vm15, %v1361_v59, -inf  ;;  %v1914_v10 = vsel %vm4550_vm15, %v1846_v60, -inf  ;;  %v1363_v34 = vpop.f32.mrb[94].mxu0  ;;  %v1848_v25 = vpop.f32.mrb[94].mxu1 }
 0x332   : > { %v1555_v43 = vmax.f32 %v1553_v29, %v1493_v9  ;;  %v1976_v16 = vmax.f32 %v1974_v30, %v1914_v10  ;;  %v1494_v17 = vsel %vm4555_vm0, %v1363_v34, -inf  ;;  %v1915_v18 = vsel %vm4555_vm0, %v1848_v25, -inf  ;;  %v1365_v19 = vpop.f32.mrb[95].mxu0  ;;  %v1850_v31 = vpop.f32.mrb[95].mxu1 }
 0x333   : > { %v1525_v14 = vmax.f32 %v1523_v22, %v1494_v17  ;;  %v1946_v15 = vmax.f32 %v1944_v27, %v1915_v18  ;;  %v1495_v24 = vsel %vm4555_vm0, %v1365_v19, -inf  ;;  %v1916_v58 = vsel %vm4555_vm0, %v1850_v31, -inf  ;;  %v4580_v22 = vld [vmem:[%s4926_s7] sm:$0xff] }
 0x334   : > { %v1556_v42 = vmax.f32 %v1554_v49, %v1495_v24  ;;  %v1977_v36 = vmax.f32 %v1975_v55, %v1916_v58  ;;  %5055 = vst [vmem:[#allocation17_spill] sm:$0xff] %v4580_v22  ;;  %v2894_v59 = vsub.s32 1, %v4103_v4  ;;  %v2891_v17 = vrot.slane %v4580_v22, %v2890_v45 }
 0x335   : > { %v1526_v29 = vmax.f32 %v1524_v56, %v1525_v14  ;;  %v1947_v30 = vmax.f32 %v1945_v57, %v1946_v15  ;;  %v2902_v57 = vsub.s32 3, %v4103_v4  ;;  %v2899_v58 = vrot.slane %v4580_v22, %v2898_v26 }
 0x336   : > { %v1557_v48 = vmax.f32 %v1555_v43, %v1556_v42  ;;  %v1978_v44 = vmax.f32 %v1976_v16, %v1977_v36  ;;  %v2895_v42 = vrot.slane %v4580_v22, %v2894_v59 }
 0x337   : > { %v2838_v51 = vrot.slane %v1526_v29, 4  ;;  %v2850_v27 = vrot.slane %v1947_v30, 4  ;;  %v2115_v60 = vpop.f32.mrb[96].mxu0  ;;  %v2536_v49 = vpop.f32.mrb[96].mxu1  ;;  %v2903_v39 = vrot.slane %v4580_v22, %v2902_v57 }
 0x338   : > { %v2844_v55 = vrot.slane %v1557_v48, 4  ;;  %v2856_v56 = vrot.slane %v1978_v44, 4  ;;  %v2117_v9 = vpop.f32.mrb[97].mxu0  ;;  %v2538_v10 = vpop.f32.mrb[97].mxu1  ;;  %v2274_v45 = vsel %vm4114_vm1, %v2115_v60, -inf }
 0x339   : > { %v2839_v34 = vmax.f32 %v1526_v29, %v2838_v51  ;;  %v2851_v25 = vmax.f32 %v1947_v30, %v2850_v27  ;;  %v2119_v43 = vpop.f32.mrb[98].mxu0  ;;  %v2540_v16 = vpop.f32.mrb[98].mxu1  ;;  %v3486_v29 = vmov 1966171168   ;;  %v2275_v26 = vsel %vm4114_vm1, %v2117_v9, -inf }
 0x33a   : > { %v2845_v18 = vmax.f32 %v1557_v48, %v2844_v55  ;;  %v2857_v19 = vmax.f32 %v1978_v44, %v2856_v56  ;;  %v2121_v31 = vpop.f32.mrb[99].mxu0  ;;  %v2542_v14 = vpop.f32.mrb[99].mxu1  ;;  %v4588_v30 = vunpack.c.l.s4 %v3486_v29  ;;  %v2695_v48 = vsel %vm4114_vm1, %v2536_v49, -inf }
 0x33b   : > { %v2840_v15 = vrot.slane %v2839_v34, 2  ;;  %v2852_v24 = vrot.slane %v2851_v25, 2  ;;  %v2696_v59 = vsel %vm4114_vm1, %v2538_v10, -inf  ;;  %v2277_v53 = vsel %vm4119_vm2, %v2121_v31, -inf }
 0x33c   : > { %v2846_v36 = vrot.slane %v2845_v18, 2  ;;  %v2858_v63 = vrot.slane %v2857_v19, 2  ;;  %vm5056_vm1 = vnez %v5009_v5 }
 0x33d   : > { %v2841_v51 = vmax.f32 %v2839_v34, %v2840_v15  ;;  %v2853_v27 = vmax.f32 %v2851_v25, %v2852_v24  ;;  %v2276_v34 = vsel %vm4119_vm2, %v2119_v43, -inf  ;;  %v2697_v25 = vsel %vm4119_vm2, %v2540_v16, -inf }
 0x33e   : > { %v2847_v44 = vmax.f32 %v2845_v18, %v2846_v36  ;;  %v2859_v55 = vmax.f32 %v2857_v19, %v2858_v63 }
 0x33f   : > { %v2842_v56 = vrot.slane %v2841_v51, 1  ;;  %v2854_v57 = vrot.slane %v2853_v27, 1  ;;  %v2125_v60 = vpop.f32.mrb[100].mxu0  ;;  %v2546_v15 = vpop.f32.mrb[100].mxu1 }
 0x340   : > { %v2848_v24 = vrot.slane %v2847_v44, 1  ;;  %v2860_v49 = vrot.slane %v2859_v55, 1  ;;  %v2278_v63 = vsel %vm4126_vm3, %v2125_v60, -inf  ;;  %v2699_v9 = vsel %vm4126_vm3, %v2546_v15, -inf  ;;  %v2127_v50 = vpop.f32.mrb[101].mxu0  ;;  %v2548_v10 = vpop.f32.mrb[101].mxu1 }
 0x341   : > { %v2843_v18 = vmax.f32 %v2841_v51, %v2842_v56  ;;  %v2855_v19 = vmax.f32 %v2853_v27, %v2854_v57  ;;  %v2338_v36 = vmax.f32 %v2274_v45, %v2278_v63  ;;  %v2759_v29 = vmax.f32 %v2695_v48, %v2699_v9  ;;  %v2129_v43 = vpop.f32.mrb[102].mxu0  ;;  %v2550_v22 = vpop.f32.mrb[102].mxu1 }
 0x342   : > { %v2849_v1 = vmax.f32 %v2847_v44, %v2848_v24  ;;  %v2861_v16 = vmax.f32 %v2859_v55, %v2860_v49  ;;  %v2279_v47 = vsel %vm4126_vm3, %v2127_v50, -inf  ;;  %v2700_v12 = vsel %vm4126_vm3, %v2548_v10, -inf  ;;  %v2131_v60 = vpop.f32.mrb[103].mxu0  ;;  %v2552_v7 = vpop.f32.mrb[103].mxu1 }
 0x343   : > { %v2928_v28 = vadd.f32 %v2891_v17, %v2843_v18  ;;  %v2930_v15 = vadd.f32 %v2899_v58, %v2855_v19  ;;  %v2369_v21 = vmax.f32 %v2275_v26, %v2279_v47  ;;  %v2790_v61 = vmax.f32 %v2696_v59, %v2700_v12 }
 0x344   : > { %v2929_v51 = vadd.f32 %v2895_v42, %v2849_v1  ;;  %v2931_v27 = vadd.f32 %v2903_v39, %v2861_v16  ;;  %v2280_v45 = vsel %vm4131_vm4, %v2129_v43, -inf  ;;  %v2701_v48 = vsel %vm4131_vm4, %v2550_v22, -inf }
 0x345   : > { %v2339_v44 = vmax.f32 %v2276_v34, %v2280_v45  ;;  %v2760_v55 = vmax.f32 %v2697_v25, %v2701_v48  ;;  %v2958_v56 = vunpack.c.0.s8 %v4588_v30  ;;  %v2698_v17 = vsel %vm4119_vm2, %v2542_v14, -inf }
 0x346   : > { %v2281_v12 = vsel %vm4131_vm4, %v2131_v60, -inf  ;;  %v2702_v47 = vsel %vm4131_vm4, %v2552_v7, -inf  ;;  %v2936_v1 = vmax.f32 %v2928_v28, 0.0  ;;  %v2938_v39 = vmax.f32 %v2930_v15, 0.0 }
 0x347   : > { %v2370_v58 = vmax.f32 %v2277_v53, %v2281_v12  ;;  %v2791_v22 = vmax.f32 %v2698_v17, %v2702_v47  ;;  %v2135_v42 = vpop.f32.mrb[104].mxu0  ;;  %v2556_v26 = vpop.f32.mrb[104].mxu1  ;;  %v2937_v59 = vmax.f32 %v2929_v51, 0.0  ;;  %v2939_v30 = vmax.f32 %v2931_v27, 0.0 }
 0x348   : > { %v2282_v31 = vsel %vm4174_vm5, %v2135_v42, -inf  ;;  %v2703_v52 = vsel %vm4174_vm5, %v2556_v26, -inf  ;;  %v2137_v14 = vpop.f32.mrb[105].mxu0  ;;  %v2558_v57 = vpop.f32.mrb[105].mxu1  ;;  %vm5057_vm2 = vnez %v5011_v11  ;;  %vm5058_vm3 = vnez %v5013_v13 }
 0x349   : > { %v2340_v34 = vmax.f32 %v2338_v36, %v2282_v31  ;;  %v2761_v25 = vmax.f32 %v2759_v29, %v2703_v52  ;;  %v2283_v54 = vsel %vm4174_vm5, %v2137_v14, -inf  ;;  %v2704_v28 = vsel %vm4174_vm5, %v2558_v57, -inf  ;;  %v2139_v7 = vpop.f32.mrb[106].mxu0  ;;  %v2560_v24 = vpop.f32.mrb[106].mxu1 }
 0x34a   : > { %v2371_v49 = vmax.f32 %v2369_v21, %v2283_v54  ;;  %v2792_v63 = vmax.f32 %v2790_v61, %v2704_v28  ;;  %v2284_v9 = vsel %vm4181_vm6, %v2139_v7, -inf  ;;  %v2705_v50 = vsel %vm4181_vm6, %v2560_v24, -inf  ;;  %v2141_v10 = vpop.f32.mrb[107].mxu0  ;;  %v2562_v18 = vpop.f32.mrb[107].mxu1 }
 0x34b   : > { %v2341_v19 = vmax.f32 %v2339_v44, %v2284_v9  ;;  %v2762_v36 = vmax.f32 %v2760_v55, %v2705_v50  ;;  %v2285_v29 = vsel %vm4181_vm6, %v2141_v10, -inf  ;;  %v2706_v32 = vsel %vm4181_vm6, %v2562_v18, -inf }
 0x34c   : > { %v2372_v43 = vmax.f32 %v2370_v58, %v2285_v29  ;;  %v2793_v16 = vmax.f32 %v2791_v22, %v2706_v32  ;;  %v4640_v61 = vsub.s32 %v2958_v56, %v4103_v4  ;;  %v2952_v21 = vcombine.low %v2936_v1, %v2937_v59 }
 0x34d   : > { %v2953_v60 = vcombine.low %v2938_v39, %v2939_v30  ;;  %vm5059_vm4 = vnez %v5015_v35  ;;  %vm5060_vm5 = vnez %v5017_v46  ;;  %vm5061_vm6 = vnez %v5019_v20 }
 0x34e   : > { %v2962_v38 = vrot.slane %v2952_v21, %v4640_v61 }
 0x34f   : > { %v2145_v15 = vpop.f32.mrb[108].mxu0  ;;  %v2566_v51 = vpop.f32.mrb[108].mxu1  ;;  %v2969_v55 = vrot.slane %v2953_v60, %v4640_v61 }
 0x350   : > { %v2286_v27 = vsel %vm4206_vm7, %v2145_v15, -inf  ;;  %v2707_v45 = vsel %vm4206_vm7, %v2566_v51, -inf  ;;  %v2147_v48 = vpop.f32.mrb[109].mxu0  ;;  %v2568_v44 = vpop.f32.mrb[109].mxu1 }
 0x351   : > { %v2342_v53 = vmax.f32 %v2340_v34, %v2286_v27  ;;  %v2763_v17 = vmax.f32 %v2761_v25, %v2707_v45  ;;  %v2287_v56 = vsel %vm4206_vm7, %v2147_v48, -inf  ;;  %v2708_v12 = vsel %vm4206_vm7, %v2568_v44, -inf  ;;  %v2149_v47 = vpop.f32.mrb[110].mxu0  ;;  %v2570_v1 = vpop.f32.mrb[110].mxu1 }
 0x352   : > { %v2373_v39 = vmax.f32 %v2371_v49, %v2287_v56  ;;  %v2794_v58 = vmax.f32 %v2792_v63, %v2708_v12  ;;  %v2288_v22 = vsel %vm4213_vm8, %v2149_v47, -inf  ;;  %v2709_v42 = vsel %vm4213_vm8, %v2570_v1, -inf  ;;  %v2151_v26 = vpop.f32.mrb[111].mxu0  ;;  %v2572_v59 = vpop.f32.mrb[111].mxu1 }
 0x353   : > { %v2343_v30 = vmax.f32 %v2341_v19, %v2288_v22  ;;  %v2764_v31 = vmax.f32 %v2762_v36, %v2709_v42  ;;  %v2289_v52 = vsel %vm4213_vm8, %v2151_v26, -inf  ;;  %v2710_v2 = vsel %vm4213_vm8, %v2572_v59, -inf }
 0x354   : > { %v2374_v14 = vmax.f32 %v2372_v43, %v2289_v52  ;;  %v2795_v57 = vmax.f32 %v2793_v16, %v2710_v2  ;;  %v4660_v34 = vcombine.low %v2962_v38, %v2969_v55  ;;  %vm5062_vm7 = vnez %v5021_v23 }
 0x355   : > { %vm5063_vm8 = vnez %v5023_v62 }
 0x357   : > { %v2155_v25 = vpop.f32.mrb[112].mxu0  ;;  %v2576_v54 = vpop.f32.mrb[112].mxu1 }
 0x358   : > { %v2290_v28 = vsel %vm4238_vm9, %v2155_v25, -inf  ;;  %v2711_v7 = vsel %vm4238_vm9, %v2576_v54, -inf  ;;  %v2157_v24 = vpop.f32.mrb[113].mxu0  ;;  %v2578_v49 = vpop.f32.mrb[113].mxu1 }
 0x359   : > { %v2344_v63 = vmax.f32 %v2342_v53, %v2290_v28  ;;  %v2765_v9 = vmax.f32 %v2763_v17, %v2711_v7  ;;  %v2291_v6 = vsel %vm4238_vm9, %v2157_v24, -inf  ;;  %v2712_v50 = vsel %vm4238_vm9, %v2578_v49, -inf  ;;  %v2159_v10 = vpop.f32.mrb[114].mxu0  ;;  %v2580_v18 = vpop.f32.mrb[114].mxu1 }
 0x35a   : > { %v2375_v19 = vmax.f32 %v2373_v39, %v2291_v6  ;;  %v2796_v36 = vmax.f32 %v2794_v58, %v2712_v50  ;;  %v2292_v29 = vsel %vm4245_vm10, %v2159_v10, -inf  ;;  %v2713_v32 = vsel %vm4245_vm10, %v2580_v18, -inf  ;;  %v2161_v43 = vpop.f32.mrb[115].mxu0  ;;  %v2582_v16 = vpop.f32.mrb[115].mxu1 }
 0x35b   : > { %v2345_v21 = vmax.f32 %v2343_v30, %v2292_v29  ;;  %v2766_v60 = vmax.f32 %v2764_v31, %v2713_v32  ;;  %v2293_v15 = vsel %vm4245_vm10, %v2161_v43, -inf  ;;  %v2714_v37 = vsel %vm4245_vm10, %v2582_v16, -inf }
 0x35c   : > { %v2376_v51 = vmax.f32 %v2374_v14, %v2293_v15  ;;  %v2797_v27 = vmax.f32 %v2795_v57, %v2714_v37  ;;  %vm5064_vm9 = vnez %v5025_v0  ;;  %vm5065_vm10 = vnez %v5027_v33 }
 0x35f   : > { %v2165_v45 = vpop.f32.mrb[116].mxu0  ;;  %v2586_v48 = vpop.f32.mrb[116].mxu1 }
 0x360   : > { %v2294_v44 = vsel %vm4270_vm11, %v2165_v45, -inf  ;;  %v2715_v38 = vsel %vm4270_vm11, %v2586_v48, -inf  ;;  %v2167_v55 = vpop.f32.mrb[117].mxu0  ;;  %v2588_v53 = vpop.f32.mrb[117].mxu1 }
 0x361   : > { %v2346_v17 = vmax.f32 %v2344_v63, %v2294_v44  ;;  %v2767_v56 = vmax.f32 %v2765_v9, %v2715_v38  ;;  %v2295_v12 = vsel %vm4270_vm11, %v2167_v55, -inf  ;;  %v2716_v40 = vsel %vm4270_vm11, %v2588_v53, -inf  ;;  %v2169_v47 = vpop.f32.mrb[118].mxu0  ;;  %v2590_v1 = vpop.f32.mrb[118].mxu1 }
 0x362   : > { %v2377_v39 = vmax.f32 %v2375_v19, %v2295_v12  ;;  %v2798_v58 = vmax.f32 %v2796_v36, %v2716_v40  ;;  %v2296_v22 = vsel %vm4275_vm12, %v2169_v47, -inf  ;;  %v2717_v42 = vsel %vm4275_vm12, %v2590_v1, -inf  ;;  %v2171_v26 = vpop.f32.mrb[119].mxu0  ;;  %v2592_v59 = vpop.f32.mrb[119].mxu1 }
 0x363   : > { %v2347_v30 = vmax.f32 %v2345_v21, %v2296_v22  ;;  %v2768_v31 = vmax.f32 %v2766_v60, %v2717_v42  ;;  %v2297_v52 = vsel %vm4275_vm12, %v2171_v26, -inf  ;;  %v2718_v3 = vsel %vm4275_vm12, %v2592_v59, -inf }
 0x364   : > { %v2378_v2 = vmax.f32 %v2376_v51, %v2297_v52  ;;  %v2799_v14 = vmax.f32 %v2797_v27, %v2718_v3 }
 0x367   : > { %v2175_v57 = vpop.f32.mrb[120].mxu0  ;;  %v2596_v25 = vpop.f32.mrb[120].mxu1 }
 0x368   : > { %v2298_v54 = vsel %vm4298_vm13, %v2175_v57, -inf  ;;  %v2719_v28 = vsel %vm4298_vm13, %v2596_v25, -inf  ;;  %v2177_v7 = vpop.f32.mrb[121].mxu0  ;;  %v2598_v24 = vpop.f32.mrb[121].mxu1 }
 0x369   : > { %v2348_v49 = vmax.f32 %v2346_v17, %v2298_v54  ;;  %v2769_v63 = vmax.f32 %v2767_v56, %v2719_v28  ;;  %v2299_v9 = vsel %vm4298_vm13, %v2177_v7, -inf  ;;  %v2720_v8 = vsel %vm4298_vm13, %v2598_v24, -inf  ;;  %v2179_v6 = vpop.f32.mrb[122].mxu0  ;;  %v2600_v50 = vpop.f32.mrb[122].mxu1 }
 0x36a   : > { %v2379_v10 = vmax.f32 %v2377_v39, %v2299_v9  ;;  %v2800_v18 = vmax.f32 %v2798_v58, %v2720_v8  ;;  %v2300_v19 = vsel %vm5056_vm1, %v2179_v6, -inf  ;;  %v2721_v36 = vsel %vm5056_vm1, %v2600_v50, -inf  ;;  %v2181_v29 = vpop.f32.mrb[123].mxu0  ;;  %v2602_v32 = vpop.f32.mrb[123].mxu1 }
 0x36b   : > { %v2349_v43 = vmax.f32 %v2347_v30, %v2300_v19  ;;  %v2770_v16 = vmax.f32 %v2768_v31, %v2721_v36  ;;  %v2301_v21 = vsel %vm5056_vm1, %v2181_v29, -inf  ;;  %v2722_v41 = vsel %vm5056_vm1, %v2602_v32, -inf }
 0x36c   : > { %v2380_v60 = vmax.f32 %v2378_v2, %v2301_v21  ;;  %v2801_v15 = vmax.f32 %v2799_v14, %v2722_v41 }
 0x36f   : > { %v2185_v37 = vpop.f32.mrb[124].mxu0  ;;  %v2606_v51 = vpop.f32.mrb[124].mxu1 }
 0x370   : > { %v2302_v27 = vsel %vm5057_vm2, %v2185_v37, -inf  ;;  %v2723_v45 = vsel %vm5057_vm2, %v2606_v51, -inf  ;;  %v2187_v48 = vpop.f32.mrb[125].mxu0  ;;  %v2608_v44 = vpop.f32.mrb[125].mxu1 }
 0x371   : > { %v2350_v38 = vmax.f32 %v2348_v49, %v2302_v27  ;;  %v2771_v55 = vmax.f32 %v2769_v63, %v2723_v45  ;;  %v2303_v53 = vsel %vm5057_vm2, %v2187_v48, -inf  ;;  %v2724_v5 = vsel %vm5057_vm2, %v2608_v44, -inf  ;;  %v2189_v17 = vpop.f32.mrb[126].mxu0  ;;  %v2610_v56 = vpop.f32.mrb[126].mxu1 }
 0x372   : > { %v2381_v12 = vmax.f32 %v2379_v10, %v2303_v53  ;;  %v2802_v40 = vmax.f32 %v2800_v18, %v2724_v5  ;;  %v2304_v47 = vsel %vm5058_vm3, %v2189_v17, -inf  ;;  %v2725_v1 = vsel %vm5058_vm3, %v2610_v56, -inf  ;;  %v2191_v39 = vpop.f32.mrb[127].mxu0  ;;  %v2612_v58 = vpop.f32.mrb[127].mxu1 }
 0x373   : > { %v2351_v22 = vmax.f32 %v2349_v43, %v2304_v47  ;;  %v2772_v42 = vmax.f32 %v2770_v16, %v2725_v1  ;;  %v2305_v26 = vsel %vm5058_vm3, %v2191_v39, -inf  ;;  %v2726_v11 = vsel %vm5058_vm3, %v2612_v58, -inf }
 0x374   : > { %v2382_v59 = vmax.f32 %v2380_v60, %v2305_v26  ;;  %v2803_v30 = vmax.f32 %v2801_v15, %v2726_v11 }
 0x377   : > { %v2195_v31 = vpop.f32.mrb[128].mxu0  ;;  %v2616_v52 = vpop.f32.mrb[128].mxu1 }
 0x378   : > { %v2306_v3 = vsel %vm5059_vm4, %v2195_v31, -inf  ;;  %v2727_v2 = vsel %vm5059_vm4, %v2616_v52, -inf  ;;  %v2197_v14 = vpop.f32.mrb[129].mxu0  ;;  %v2618_v57 = vpop.f32.mrb[129].mxu1 }
 0x379   : > { %v2352_v25 = vmax.f32 %v2350_v38, %v2306_v3  ;;  %v2773_v54 = vmax.f32 %v2771_v55, %v2727_v2  ;;  %v2307_v28 = vsel %vm5059_vm4, %v2197_v14, -inf  ;;  %v2728_v13 = vsel %vm5059_vm4, %v2618_v57, -inf  ;;  %v2199_v7 = vpop.f32.mrb[130].mxu0  ;;  %v2620_v24 = vpop.f32.mrb[130].mxu1 }
 0x37a   : > { %v2383_v49 = vmax.f32 %v2381_v12, %v2307_v28  ;;  %v2804_v63 = vmax.f32 %v2802_v40, %v2728_v13  ;;  %v2308_v9 = vsel %vm5060_vm5, %v2199_v7, -inf  ;;  %v2729_v8 = vsel %vm5060_vm5, %v2620_v24, -inf  ;;  %v2201_v6 = vpop.f32.mrb[131].mxu0  ;;  %v2622_v50 = vpop.f32.mrb[131].mxu1 }
 0x37b   : > { %v2353_v10 = vmax.f32 %v2351_v22, %v2308_v9  ;;  %v2774_v18 = vmax.f32 %v2772_v42, %v2729_v8  ;;  %v2309_v19 = vsel %vm5060_vm5, %v2201_v6, -inf  ;;  %v2730_v35 = vsel %vm5060_vm5, %v2622_v50, -inf }
 0x37c   : > { %v2384_v36 = vmax.f32 %v2382_v59, %v2309_v19  ;;  %v2805_v29 = vmax.f32 %v2803_v30, %v2730_v35 }
 0x37f   : > { %v2205_v32 = vpop.f32.mrb[132].mxu0  ;;  %v2626_v43 = vpop.f32.mrb[132].mxu1 }
 0x380   : > { %v2310_v16 = vsel %vm5061_vm6, %v2205_v32, -inf  ;;  %v2731_v21 = vsel %vm5061_vm6, %v2626_v43, -inf  ;;  %v2207_v41 = vpop.f32.mrb[133].mxu0  ;;  %v2628_v60 = vpop.f32.mrb[133].mxu1 }
 0x381   : > { %v2354_v15 = vmax.f32 %v2352_v25, %v2310_v16  ;;  %v2775_v37 = vmax.f32 %v2773_v54, %v2731_v21  ;;  %v2311_v51 = vsel %vm5061_vm6, %v2207_v41, -inf  ;;  %v2732_v46 = vsel %vm5061_vm6, %v2628_v60, -inf  ;;  %v2209_v27 = vpop.f32.mrb[134].mxu0  ;;  %v2630_v45 = vpop.f32.mrb[134].mxu1  ;;  %v5066_v16 = vld [vmem:[#allocation8_spill] sm:$0xff] }
 0x382   : > { %v2385_v48 = vmax.f32 %v2383_v49, %v2311_v51  ;;  %v2806_v44 = vmax.f32 %v2804_v63, %v2732_v46  ;;  %v2312_v38 = vsel %vm5062_vm7, %v2209_v27, -inf  ;;  %v2733_v55 = vsel %vm5062_vm7, %v2630_v45, -inf  ;;  %v2211_v53 = vpop.f32.mrb[135].mxu0  ;;  %v2632_v5 = vpop.f32.mrb[135].mxu1 }
 0x383   : > { %v2355_v17 = vmax.f32 %v2353_v10, %v2312_v38  ;;  %v2776_v56 = vmax.f32 %v2774_v18, %v2733_v55  ;;  %v2313_v12 = vsel %vm5062_vm7, %v2211_v53, -inf  ;;  %v2734_v20 = vsel %vm5062_vm7, %v2632_v5, -inf  ;;  %v5068_v38 = vld [vmem:[#allocation9_spill] sm:$0xff] }
 0x384   : > { %v2386_v40 = vmax.f32 %v2384_v36, %v2313_v12  ;;  %v2807_v47 = vmax.f32 %v2805_v29, %v2734_v20  ;;  %vm5067_vm11 = vnez %v5066_v16  ;;  %vm5069_vm12 = vnez %v5068_v38 }
 0x387   : > { %v2215_v1 = vpop.f32.mrb[136].mxu0  ;;  %v2636_v39 = vpop.f32.mrb[136].mxu1 }
 0x388   : > { %v2314_v58 = vsel %vm5063_vm8, %v2215_v1, -inf  ;;  %v2735_v22 = vsel %vm5063_vm8, %v2636_v39, -inf  ;;  %v2217_v42 = vpop.f32.mrb[137].mxu0  ;;  %v2638_v26 = vpop.f32.mrb[137].mxu1 }
 0x389   : > { %v2356_v11 = vmax.f32 %v2354_v15, %v2314_v58  ;;  %v2777_v59 = vmax.f32 %v2775_v37, %v2735_v22  ;;  %v2315_v30 = vsel %vm5063_vm8, %v2217_v42, -inf  ;;  %v2736_v23 = vsel %vm5063_vm8, %v2638_v26, -inf  ;;  %v2219_v31 = vpop.f32.mrb[138].mxu0  ;;  %v2640_v52 = vpop.f32.mrb[138].mxu1  ;;  %v5070_v22 = vld [vmem:[#allocation10_spill] sm:$0xff] }
 0x38a   : > { %v2387_v3 = vmax.f32 %v2385_v48, %v2315_v30  ;;  %v2808_v2 = vmax.f32 %v2806_v44, %v2736_v23  ;;  %v2316_v14 = vsel %vm5064_vm9, %v2219_v31, -inf  ;;  %v2737_v57 = vsel %vm5064_vm9, %v2640_v52, -inf  ;;  %v2221_v25 = vpop.f32.mrb[139].mxu0  ;;  %v2642_v54 = vpop.f32.mrb[139].mxu1 }
 0x38b   : > { %v2357_v28 = vmax.f32 %v2355_v17, %v2316_v14  ;;  %v2778_v13 = vmax.f32 %v2776_v56, %v2737_v57  ;;  %v2317_v7 = vsel %vm5064_vm9, %v2221_v25, -inf  ;;  %v2738_v62 = vsel %vm5064_vm9, %v2642_v54, -inf  ;;  %v5072_v25 = vld [vmem:[#allocation11_spill] sm:$0xff] }
 0x38c   : > { %v2388_v24 = vmax.f32 %v2386_v40, %v2317_v7  ;;  %v2809_v49 = vmax.f32 %v2807_v47, %v2738_v62  ;;  %vm5071_vm13 = vnez %v5070_v22  ;;  %vm5073_vm1 = vnez %v5072_v25 }
 0x38f   : > { %v2225_v63 = vpop.f32.mrb[140].mxu0  ;;  %v2646_v9 = vpop.f32.mrb[140].mxu1 }
 0x390   : > { %v2318_v8 = vsel %vm5065_vm10, %v2225_v63, -inf  ;;  %v2739_v6 = vsel %vm5065_vm10, %v2646_v9, -inf  ;;  %v2227_v50 = vpop.f32.mrb[141].mxu0  ;;  %v2648_v10 = vpop.f32.mrb[141].mxu1 }
 0x391   : > { %v2358_v18 = vmax.f32 %v2356_v11, %v2318_v8  ;;  %v2779_v19 = vmax.f32 %v2777_v59, %v2739_v6  ;;  %v2319_v35 = vsel %vm5065_vm10, %v2227_v50, -inf  ;;  %v2740_v0 = vsel %vm5065_vm10, %v2648_v10, -inf  ;;  %v2229_v36 = vpop.f32.mrb[142].mxu0  ;;  %v2650_v29 = vpop.f32.mrb[142].mxu1  ;;  %v5074_v10 = vld [vmem:[#allocation12_spill] sm:$0xff] }
 0x392   : > { %v2389_v32 = vmax.f32 %v2387_v3, %v2319_v35  ;;  %v2810_v43 = vmax.f32 %v2808_v2, %v2740_v0  ;;  %v2320_v21 = vsel %vm5067_vm11, %v2229_v36, -inf  ;;  %v2741_v41 = vsel %vm5067_vm11, %v2650_v29, -inf  ;;  %v2231_v60 = vpop.f32.mrb[143].mxu0  ;;  %v2652_v15 = vpop.f32.mrb[143].mxu1 }
 0x393   : > { %v2359_v37 = vmax.f32 %v2357_v28, %v2320_v21  ;;  %v2780_v51 = vmax.f32 %v2778_v13, %v2741_v41  ;;  %v2321_v46 = vsel %vm5067_vm11, %v2231_v60, -inf  ;;  %v2742_v33 = vsel %vm5067_vm11, %v2652_v15, -inf  ;;  %v5076_v15 = vld [vmem:[#allocation13_spill] sm:$0xff] }
 0x394   : > { %v2390_v27 = vmax.f32 %v2388_v24, %v2321_v46  ;;  %v2811_v45 = vmax.f32 %v2809_v49, %v2742_v33  ;;  %vm5075_vm2 = vnez %v5074_v10  ;;  %vm5077_vm3 = vnez %v5076_v15 }
 0x397   : > { %v2235_v48 = vpop.f32.mrb[144].mxu0  ;;  %v2656_v44 = vpop.f32.mrb[144].mxu1 }
 0x398   : > { %v2322_v55 = vsel %vm5069_vm12, %v2235_v48, -inf  ;;  %v2743_v53 = vsel %vm5069_vm12, %v2656_v44, -inf  ;;  %v2237_v5 = vpop.f32.mrb[145].mxu0  ;;  %v2658_v17 = vpop.f32.mrb[145].mxu1 }
 0x399   : > { %v2360_v56 = vmax.f32 %v2358_v18, %v2322_v55  ;;  %v2781_v12 = vmax.f32 %v2779_v19, %v2743_v53  ;;  %v2323_v20 = vsel %vm5069_vm12, %v2237_v5, -inf  ;;  %v2744_v40 = vsel %vm5069_vm12, %v2658_v17, -inf  ;;  %v2239_v47 = vpop.f32.mrb[146].mxu0  ;;  %v2660_v1 = vpop.f32.mrb[146].mxu1 }
 0x39a   : > { %v2391_v39 = vmax.f32 %v2389_v32, %v2323_v20  ;;  %v2812_v58 = vmax.f32 %v2810_v43, %v2744_v40  ;;  %v2324_v42 = vsel %vm5071_vm13, %v2239_v47, -inf  ;;  %v2745_v26 = vsel %vm5071_vm13, %v2660_v1, -inf  ;;  %v2241_v11 = vpop.f32.mrb[147].mxu0  ;;  %v2662_v59 = vpop.f32.mrb[147].mxu1 }
 0x39b   : > { %v2361_v30 = vmax.f32 %v2359_v37, %v2324_v42  ;;  %v2782_v23 = vmax.f32 %v2780_v51, %v2745_v26  ;;  %v2325_v31 = vsel %vm5071_vm13, %v2241_v11, -inf  ;;  %v2746_v52 = vsel %vm5071_vm13, %v2662_v59, -inf }
 0x39c   : > { %v2392_v3 = vmax.f32 %v2390_v27, %v2325_v31  ;;  %v2813_v2 = vmax.f32 %v2811_v45, %v2746_v52 }
 0x39f   : > { %v2245_v14 = vpop.f32.mrb[148].mxu0  ;;  %v2666_v57 = vpop.f32.mrb[148].mxu1 }
 0x3a0   : > { %v2326_v54 = vsel %vm5073_vm1, %v2245_v14, -inf  ;;  %v2747_v28 = vsel %vm5073_vm1, %v2666_v57, -inf  ;;  %v2247_v13 = vpop.f32.mrb[149].mxu0  ;;  %v2668_v7 = vpop.f32.mrb[149].mxu1 }
 0x3a1   : > { %v2362_v62 = vmax.f32 %v2360_v56, %v2326_v54  ;;  %v2783_v24 = vmax.f32 %v2781_v12, %v2747_v28  ;;  %v2327_v49 = vsel %vm5073_vm1, %v2247_v13, -inf  ;;  %v2748_v63 = vsel %vm5073_vm1, %v2668_v7, -inf  ;;  %v2249_v9 = vpop.f32.mrb[150].mxu0  ;;  %v2670_v8 = vpop.f32.mrb[150].mxu1 }
 0x3a2   : > { %v2393_v6 = vmax.f32 %v2391_v39, %v2327_v49  ;;  %v2814_v50 = vmax.f32 %v2812_v58, %v2748_v63  ;;  %v2328_v18 = vsel %vm5075_vm2, %v2249_v9, -inf  ;;  %v2749_v19 = vsel %vm5075_vm2, %v2670_v8, -inf  ;;  %v2251_v35 = vpop.f32.mrb[151].mxu0  ;;  %v2672_v0 = vpop.f32.mrb[151].mxu1 }
 0x3a3   : > { %v2363_v36 = vmax.f32 %v2361_v30, %v2328_v18  ;;  %v2784_v29 = vmax.f32 %v2782_v23, %v2749_v19  ;;  %v2329_v32 = vsel %vm5075_vm2, %v2251_v35, -inf  ;;  %v2750_v43 = vsel %vm5075_vm2, %v2672_v0, -inf }
 0x3a4   : > { %v2394_v16 = vmax.f32 %v2392_v3, %v2329_v32  ;;  %v2815_v21 = vmax.f32 %v2813_v2, %v2750_v43 }
 0x3a7   : > { %v2255_v41 = vpop.f32.mrb[152].mxu0  ;;  %v2676_v60 = vpop.f32.mrb[152].mxu1 }
 0x3a8   : > { %v2330_v37 = vsel %vm5077_vm3, %v2255_v41, -inf  ;;  %v2751_v51 = vsel %vm5077_vm3, %v2676_v60, -inf  ;;  %v2257_v46 = vpop.f32.mrb[153].mxu0  ;;  %v2678_v33 = vpop.f32.mrb[153].mxu1 }
 0x3a9   : > { %v2364_v27 = vmax.f32 %v2362_v62, %v2330_v37  ;;  %v2785_v45 = vmax.f32 %v2783_v24, %v2751_v51  ;;  %v2331_v48 = vsel %vm5077_vm3, %v2257_v46, -inf  ;;  %v2752_v44 = vsel %vm5077_vm3, %v2678_v33, -inf  ;;  %v2259_v38 = vpop.f32.mrb[154].mxu0  ;;  %v2680_v55 = vpop.f32.mrb[154].mxu1 }
 0x3aa   : > { %v2395_v53 = vmax.f32 %v2393_v6, %v2331_v48  ;;  %v2816_v5 = vmax.f32 %v2814_v50, %v2752_v44  ;;  %v2332_v56 = vsel %vm4527_vm14, %v2259_v38, -inf  ;;  %v2753_v12 = vsel %vm4527_vm14, %v2680_v55, -inf  ;;  %v2261_v20 = vpop.f32.mrb[155].mxu0  ;;  %v2682_v40 = vpop.f32.mrb[155].mxu1 }
 0x3ab   : > { %v2365_v47 = vmax.f32 %v2363_v36, %v2332_v56  ;;  %v2786_v1 = vmax.f32 %v2784_v29, %v2753_v12  ;;  %v2333_v39 = vsel %vm4527_vm14, %v2261_v20, -inf  ;;  %v2754_v58 = vsel %vm4527_vm14, %v2682_v40, -inf  ;;  %v5081_v56 = vld [vmem:[#allocation17_spill] sm:$0xff] }
 0x3ac   : > { %v2396_v22 = vmax.f32 %v2394_v16, %v2333_v39  ;;  %v2817_v42 = vmax.f32 %v2815_v21, %v2754_v58  ;;  %v2906_v51 = vsub.s32 4, %v4103_v4  ;;  %v2914_v33 = vsub.s32 6, %v4103_v4 }
 0x3ad   : > { %v2918_v44 = vsub.s32 7, %v4103_v4 }
 0x3ae   : > { %v2907_v12 = vrot.slane %v5081_v56, %v2906_v51  ;;  %v2915_v40 = vrot.slane %v5081_v56, %v2914_v33 }
 0x3af   : > { %v2265_v26 = vpop.f32.mrb[156].mxu0  ;;  %v2686_v11 = vpop.f32.mrb[156].mxu1  ;;  %v2919_v58 = vrot.slane %v5081_v56, %v2918_v44 }
 0x3b0   : > { %v2334_v30 = vsel %vm4550_vm15, %v2265_v26, -inf  ;;  %v2755_v23 = vsel %vm4550_vm15, %v2686_v11, -inf  ;;  %v2267_v31 = vpop.f32.mrb[157].mxu0  ;;  %v2688_v52 = vpop.f32.mrb[157].mxu1 }
 0x3b1   : > { %v2366_v3 = vmax.f32 %v2364_v27, %v2334_v30  ;;  %v2787_v2 = vmax.f32 %v2785_v45, %v2755_v23  ;;  %v2335_v14 = vsel %vm4550_vm15, %v2267_v31, -inf  ;;  %v2756_v57 = vsel %vm4550_vm15, %v2688_v52, -inf  ;;  %v2269_v25 = vpop.f32.mrb[158].mxu0  ;;  %v2690_v54 = vpop.f32.mrb[158].mxu1 }
 0x3b2   : > { %v2397_v28 = vmax.f32 %v2395_v53, %v2335_v14  ;;  %v2818_v13 = vmax.f32 %v2816_v5, %v2756_v57  ;;  %v2336_v62 = vsel %vm4555_vm0, %v2269_v25, -inf  ;;  %v2757_v24 = vsel %vm4555_vm0, %v2690_v54, -inf  ;;  %v2271_v49 = vpop.f32.mrb[159].mxu0  ;;  %v2692_v63 = vpop.f32.mrb[159].mxu1 }
 0x3b3   : > { %v2367_v9 = vmax.f32 %v2365_v47, %v2336_v62  ;;  %v2788_v8 = vmax.f32 %v2786_v1, %v2757_v24  ;;  %v2337_v6 = vsel %vm4555_vm0, %v2271_v49, -inf  ;;  %v2758_v50 = vsel %vm4555_vm0, %v2692_v63, -inf }
 0x3b4   : > { %v2398_v10 = vmax.f32 %v2396_v22, %v2337_v6  ;;  %v2819_v18 = vmax.f32 %v2817_v42, %v2758_v50  ;;  %v2910_v45 = vsub.s32 5, %v4103_v4 }
 0x3b5   : > { %v2368_v19 = vmax.f32 %v2366_v3, %v2367_v9  ;;  %v2789_v35 = vmax.f32 %v2787_v2, %v2788_v8 }
 0x3b6   : > { %v2399_v0 = vmax.f32 %v2397_v28, %v2398_v10  ;;  %v2820_v36 = vmax.f32 %v2818_v13, %v2819_v18  ;;  %v2911_v1 = vrot.slane %v5081_v56, %v2910_v45  ;;  %v2992_v13 = vrot.slane %v4660_v34, %v4640_v61 }
 0x3b7   : > { %v2862_v29 = vrot.slane %v2368_v19, 4  ;;  %v2874_v32 = vrot.slane %v2789_v35, 4 }
 0x3b8   : > { %v2868_v43 = vrot.slane %v2399_v0, 4  ;;  %v2880_v16 = vrot.slane %v2820_v36, 4 }
 0x3b9   : > { %v2863_v21 = vmax.f32 %v2368_v19, %v2862_v29  ;;  %v2875_v41 = vmax.f32 %v2789_v35, %v2874_v32 }
 0x3ba   : > { %v2869_v60 = vmax.f32 %v2399_v0, %v2868_v43  ;;  %v2881_v15 = vmax.f32 %v2820_v36, %v2880_v16 }
 0x3bb   : > { %v2864_v37 = vrot.slane %v2863_v21, 2  ;;  %v2876_v46 = vrot.slane %v2875_v41, 2 }
 0x3bc   : > { %v2870_v27 = vrot.slane %v2869_v60, 2  ;;  %v2882_v48 = vrot.slane %v2881_v15, 2 }
 0x3bd   : > { %v2865_v38 = vmax.f32 %v2863_v21, %v2864_v37  ;;  %v2877_v55 = vmax.f32 %v2875_v41, %v2876_v46 }
 0x3be   : > { %v2871_v53 = vmax.f32 %v2869_v60, %v2870_v27  ;;  %v2883_v5 = vmax.f32 %v2881_v15, %v2882_v48 }
 0x3bf   : > { %v2866_v17 = vrot.slane %v2865_v38, 1  ;;  %v2878_v20 = vrot.slane %v2877_v55, 1 }
 0x3c0   : > { %v2872_v47 = vrot.slane %v2871_v53, 1  ;;  %v2884_v39 = vrot.slane %v2883_v5, 1 }
 0x3c1   : > { %v2867_v22 = vmax.f32 %v2865_v38, %v2866_v17  ;;  %v2879_v42 = vmax.f32 %v2877_v55, %v2878_v20 }
 0x3c2   : > { %v2873_v4 = vmax.f32 %v2871_v53, %v2872_v47  ;;  %v2885_v26 = vmax.f32 %v2883_v5, %v2884_v39 }
 0x3c3   : > { %v2932_v11 = vadd.f32 %v2907_v12, %v2867_v22  ;;  %v2934_v59 = vadd.f32 %v2915_v40, %v2879_v42 }
 0x3c4   : > { %v2933_v30 = vadd.f32 %v2911_v1, %v2873_v4  ;;  %v2935_v23 = vadd.f32 %v2919_v58, %v2885_v26 }
 0x3c5   : > { %v2940_v31 = vmax.f32 %v2932_v11, 0.0  ;;  %v2942_v52 = vmax.f32 %v2934_v59, 0.0 }
 0x3c6   : > { %v2941_v3 = vmax.f32 %v2933_v30, 0.0  ;;  %v2943_v2 = vmax.f32 %v2935_v23, 0.0 }
 0x3c8   : > { %v2954_v14 = vcombine.low %v2940_v31, %v2941_v3  ;;  %v2955_v57 = vcombine.low %v2942_v52, %v2943_v2 }
 0x3ca   : > { %v2976_v25 = vrot.slane %v2954_v14, %v4640_v61  ;;  %v2983_v54 = vrot.slane %v2955_v57, %v4640_v61 }
 0x3cc   : > { %v2985_v28 = vcombine.low %v2976_v25, %v2983_v54 }
 0x3ce   : > { %v2999_v7 = vrot.slane %v2985_v28, %v4640_v61 }
 0x3d0   : > { %v3000_v62 = vcombine.low %v2992_v13, %v2999_v7 }
 0x3d2   : > { %3002 = vst [vmem:[%s310_s23] sm:$0xff] %v3000_v62 }
 0x3d3   : > { %3418 = shalt.err (!%p3415_p5)
}
 0x3d4   : > { %s3419_s17 = scalar_lea.hbm %s4872_s27, 128  ;;  %s3423_s22 = scalar_lea.hbm %s4927_s8, 256 }
 0x3d5   : > { %p3420_p6 = scmp.ne.s32.totalorder %s4872_s27, %s3419_s17  ;;  %p3424_p10 = scmp.lt.u32.totalorder %s4872_s27, %s4927_s8 }
 0x3d6   : > { %p3425_p11 = scmp.lt.u32.totalorder %s3423_s22, %s3419_s17  ;;  %p3427_p13 = scmp.lt.u32.totalorder %s3419_s17, %s4872_s27 }
 0x3d7   : > { %p3421_p7 = pnand %p3420_p6, %p3576_p4 }
 0x3d8   : > { %p3426_p12 = por %p3425_p11, %p3424_p10 }
 0x3d9   : > { %p3422_p9 = pneg %p3421_p7 }
 0x3da   : > { %p3428_p0 = por %p3427_p13, %p3426_p12 }
 0x3dc   : > { %p3429_p1 = pnand %p3428_p0, %p3422_p9 }
 0x3de   : > { %3432 = shalt.err (!%p3429_p1)
}
 0x3df   : > { %3340 = dma.vmem_to_hbm [thread:$0]  (%p3576_p4), %s4874_s24, 128, %s4872_s27, %s3004_s10  }
 0x3e0 PF: > { %p3346_p2 = scmp.ge.s32.totalorder %s3483_s12, 2  ;;  %s3032_s26 = sand.u32 1, %s3463_s29  }
 0x3e1   : > { %s3033_s28 = scalar_lea.sflag [#allocation6], %s3032_s26 }
 0x3e2   : > { %p3343_p3 = pnand %p3346_p2, %p3583_p8 }
 0x3e4   : > { %3458 = dma.done.wait (!%p3343_p3), %s3033_s28, 128  }
 0x3e5   : > { %3460 = vsyncadd (!%p3343_p3), %s3033_s28, 4294967168  ;;  %s22_s12 = sadd.s32 1, %s3483_s12   ;;  %s5082_s29 = smov %s3467_s30 }
 0x3e6   : > { %p19_p5 = scmp.ge.s32.totalorder %s22_s12, 4   ;;  %s5083_s30 = smov %s3471_s9 }
 0x3e7   : > { %s5084_s9 = smov %s3589_s19  ;;  %s5085_s10 = smov %s3479_s11 }
 0x3e8   : > { %s5086_s11 = smov %s5088_s14  ;;  %21 = sbr.rel (!%p19_p5) target bundleno = 6 (0x6), region = 91 }
 0x3ef   :  { %3038 = vsyncpa [#allocation6], 1 }
 0x3f0   :  { %3040 = vsyncpa [#allocation6 + $0x1], 1 }

</bundles_post_ra>
